<compile_context>
chip_gen: v7x
topology: tpu7x:2x2x1
jax: 0.10.0
libtpu: 0.0.40
codegen_flags: <defaults>
</compile_context>

<pallas_src>
import functools

import jax
import jax.numpy as jnp
import numpy as np
from jax import lax
from jax.experimental import pallas as pl
from jax.experimental.pallas import tpu as pltpu

# --- model hyperparameters (mirrors the PyTorch script; vocab sizes are synthetic) ---
NEMB = 42
NHEAD = 1
HEADSIZ = NEMB // NHEAD          # 42
BLOCKSIZ = 128
NLAYERS = 1                      # the PyTorch script uses nlayers=1
VOCABSIZ = 384                   # stand-in for tokenizer.vocab_size (lm_head output dim)
NEW_VOCAB_SIZ = 400              # stand-in for len(tokenizer) (wte rows)
LN_EPS = 1e-5

# lane-padded dims (offline zero padding)
DPAD = 128                       # 42  -> 128
FPAD = 256                       # 168 -> 256
VOCAB_PAD = 512                  # 400 -> 512 (lane-aligned contraction for the one-hot gather)


def _gelu_tanh(x):
    # matches nn.GELU(approximate='tanh')
    c = jnp.sqrt(2.0 / jnp.pi).astype(x.dtype)
    return 0.5 * x * (1.0 + jnp.tanh(c * (x + 0.044715 * x * x * x)))


# ------------------------------ Pallas kernel ------------------------------

def gpt_kernel(B, T,
               ids_ref, mask_ref, wte_ref, wpe_ref,
               wqkv_ref, wproj_ref, bproj_ref,
               ln1g_ref, ln1b_ref, ln2g_ref, ln2b_ref,
               wfc1_ref, bfc1_ref, wfc2_ref, bfc2_ref,
               lnfg_ref, lnfb_ref, wlm_ref, blm_ref,
               out_ref):
    M = B * T

    def layernorm(h, g, b):
        # Stats over the true NEMB=42 features.  Padded columns of h are exactly 0, so
        # sum(h) / sum(h*h) only see real features; padded outputs stay 0 since g = b = 0.
        mu = jnp.sum(h, axis=-1, keepdims=True) * (1.0 / NEMB)
        var = jnp.sum(h * h, axis=-1, keepdims=True) * (1.0 / NEMB) - mu * mu
        return (h - mu) * lax.rsqrt(var + LN_EPS) * g + b

    # ---- fused token-embedding gather: one-hot matmul on the MXU (lane-aligned 512) ----
    ids = ids_ref[...]                                               # (M, 1) int32
    voc_col = lax.broadcasted_iota(jnp.int32, (M, VOCAB_PAD), 1)
    tok_oh = (voc_col == ids).astype(jnp.float32)                    # (M, VOCAB_PAD)
    tok = jnp.dot(tok_oh, wte_ref[...], preferred_element_type=jnp.float32)

    # ---- positional embedding: static slice of wpe tiled over the B sequences ----
    pos = jnp.tile(wpe_ref[0:T, :], (B, 1))                          # (M, DPAD)

    x = tok + pos                                                    # (M, DPAD), pad cols == 0

    # ---- Block.sa : fused QKV, block-diagonal causal softmax attention ----
    h = layernorm(x, ln1g_ref[...], ln1b_ref[...])
    qkv = jnp.dot(h, wqkv_ref[...], preferred_element_type=jnp.float32)   # (M, 3*DPAD)
    q = qkv[:, 0:DPAD]                       # 1/sqrt(headsiz) already folded into Wq
    k = qkv[:, DPAD:2 * DPAD]
    v = qkv[:, 2 * DPAD:3 * DPAD]

    # q @ k^T without materializing k.T (contract on dim 1 of both operands)
    s = lax.dot_general(q, k, dimension_numbers=(((1,), (1,)), ((), ())),
                        preferred_element_type=jnp.float32)          # (M, M)

    # additive block-diagonal causal mask (0 / -1e30), precomputed on host
    s = s + mask_ref[...]
    s = s - jnp.max(s, axis=-1, keepdims=True)
    e = jnp.exp(s)
    l = jnp.sum(e, axis=-1, keepdims=True)                           # (M, 1)

    # deferred softmax normalization: scale the (M, DPAD) result instead of the (M, M) matrix
    att = jnp.dot(e, v, preferred_element_type=jnp.float32)          # (M, DPAD)
    att = att * pl.reciprocal(l)                                     # exact reciprocal (EUP)

    sa = jnp.dot(att, wproj_ref[...], preferred_element_type=jnp.float32) + bproj_ref[...]
    x = x + sa

    # ---- Block.ffn : Linear -> GELU(tanh) -> Linear ----
    h2 = layernorm(x, ln2g_ref[...], ln2b_ref[...])
    ff = jnp.dot(h2, wfc1_ref[...], preferred_element_type=jnp.float32) + bfc1_ref[...]
    ff = _gelu_tanh(ff)
    ff = jnp.dot(ff, wfc2_ref[...], preferred_element_type=jnp.float32) + bfc2_ref[...]
    x = x + ff

    # ---- ln_f + lm_head (output lane-dense: 384 = 3*128 -> unmasked vst) ----
    xf = layernorm(x, lnfg_ref[...], lnfb_ref[...])
    out_ref[...] = jnp.dot(xf, wlm_ref[...], preferred_element_type=jnp.float32) + blm_ref[...]


# ------------------------------ host-side wrappers ------------------------------

def _pad2(w, rows, cols):
    out = jnp.zeros((rows, cols), jnp.float32)
    return out.at[:w.shape[0], :w.shape[1]].set(w.astype(jnp.float32))


def _pad_vec(v, cols):
    out = jnp.zeros((1, cols), jnp.float32)
    return out.at[0, :v.shape[0]].set(v.astype(jnp.float32))


def prepare_params(params):
    """One-time offline prep: lane-pad to 128/256/384/512, fuse QKV, fold attn scale into Wq."""
    scale = HEADSIZ ** -0.5
    wq_p = _pad2(params["wq"] * scale, DPAD, DPAD)
    wk_p = _pad2(params["wk"], DPAD, DPAD)
    wv_p = _pad2(params["wv"], DPAD, DPAD)
    return {
        "wte":   _pad2(params["wte"], VOCAB_PAD, DPAD),              # vocab 400 -> 512
        "wpe":   _pad2(params["wpe"], BLOCKSIZ, DPAD),
        "wqkv":  jnp.concatenate([wq_p, wk_p, wv_p], axis=1),        # (DPAD, 3*DPAD)
        "wproj": _pad2(params["wproj"], DPAD, DPAD),
        "bproj": _pad_vec(params["bproj"], DPAD),
        "ln1g":  _pad_vec(params["ln1g"], DPAD), "ln1b": _pad_vec(params["ln1b"], DPAD),
        "ln2g":  _pad_vec(params["ln2g"], DPAD), "ln2b": _pad_vec(params["ln2b"], DPAD),
        "lnfg":  _pad_vec(params["lnfg"], DPAD), "lnfb": _pad_vec(params["lnfb"], DPAD),
        "wfc1":  _pad2(params["wfc1"], DPAD, FPAD), "bfc1": _pad_vec(params["bfc1"], FPAD),
        "wfc2":  _pad2(params["wfc2"], FPAD, DPAD), "bfc2": _pad_vec(params["bfc2"], DPAD),
        "wlm":   _pad2(params["wlm"], DPAD, VOCABSIZ), "blm": _pad_vec(params["blm"], VOCABSIZ),
    }


def _block_causal_mask(B, T):
    # additive mask (0 keep / -1e30 drop): same sequence AND key position <= query position
    M = B * T
    r = np.arange(M)
    keep = (r[:, None] // T == r[None, :] // T) & (r[None, :] % T <= r[:, None] % T)
    return jnp.asarray(np.where(keep, 0.0, -1e30), dtype=jnp.float32)


def gpt_forward(ix, pp):
    B, T = ix.shape
    M = B * T
    ids = ix.reshape(M, 1).astype(jnp.int32)
    mask_add = _block_causal_mask(B, T)                              # (M, M) f32

    args = (ids, mask_add, pp["wte"], pp["wpe"], pp["wqkv"], pp["wproj"], pp["bproj"],
            pp["ln1g"], pp["ln1b"], pp["ln2g"], pp["ln2b"],
            pp["wfc1"], pp["bfc1"], pp["wfc2"], pp["bfc2"],
            pp["lnfg"], pp["lnfb"], pp["wlm"], pp["blm"])

    def full_spec(a):
        nd = a.ndim
        return pl.BlockSpec(a.shape, lambda i, _nd=nd: (0,) * _nd)

    in_specs = [full_spec(a) for a in args]
    out_spec = pl.BlockSpec((M, VOCABSIZ), lambda i: (0, 0))

    kernel = functools.partial(gpt_kernel, B, T)

    logits = pl.pallas_call(
        kernel,
        out_shape=jax.ShapeDtypeStruct((M, VOCABSIZ), jnp.float32),
        grid_spec=pltpu.PrefetchScalarGridSpec(
            num_scalar_prefetch=0,
            grid=(1,),                       # single program: batch folded into M = B*T rows
            in_specs=in_specs,
            out_specs=out_spec,
        ),
        compiler_params=pltpu.CompilerParams(dimension_semantics=("arbitrary",)),
    )(*args)
    return logits.reshape(B, T, VOCABSIZ)


# ------------------------------ init + pure-JAX reference ------------------------------

def init_params(key):
    # deterministic synthetic init: normal(0, 0.02) weights, zero biases, unit LN gammas
    ks = jax.random.split(key, 12)
    nrm = lambda k, shape: (0.02 * jax.random.normal(k, shape)).astype(jnp.float32)
    return {
        "wte":   nrm(ks[0], (NEW_VOCAB_SIZ, NEMB)),
        "wpe":   nrm(ks[1], (BLOCKSIZ, NEMB)),
        # attention (weights stored as (in, out))
        "wq":    nrm(ks[2], (NEMB, HEADSIZ)),
        "wk":    nrm(ks[3], (NEMB, HEADSIZ)),
        "wv":    nrm(ks[4], (NEMB, HEADSIZ)),
        "wproj": nrm(ks[5], (HEADSIZ * NHEAD, NEMB)),
        "bproj": jnp.zeros((NEMB,), jnp.float32),
        # layernorms
        "ln1g": jnp.ones((NEMB,), jnp.float32), "ln1b": jnp.zeros((NEMB,), jnp.float32),
        "ln2g": jnp.ones((NEMB,), jnp.float32), "ln2b": jnp.zeros((NEMB,), jnp.float32),
        "lnfg": jnp.ones((NEMB,), jnp.float32), "lnfb": jnp.zeros((NEMB,), jnp.float32),
        # feed-forward
        "wfc1": nrm(ks[6], (NEMB, 4 * NEMB)), "bfc1": jnp.zeros((4 * NEMB,), jnp.float32),
        "wfc2": nrm(ks[7], (4 * NEMB, NEMB)), "bfc2": jnp.zeros((NEMB,), jnp.float32),
        # lm_head
        "wlm":  nrm(ks[8], (NEMB, VOCABSIZ)), "blm": jnp.zeros((VOCABSIZ,), jnp.float32),
    }


def _layernorm_ref(h, g, b):
    mu = jnp.mean(h, axis=-1, keepdims=True)
    var = jnp.mean((h - mu) ** 2, axis=-1, keepdims=True)
    return (h - mu) * lax.rsqrt(var + LN_EPS) * g + b


def reference_forward(ix, params):
    # pure-JAX reference of the same math (unpadded), for validation
    def one_seq(x):
        h = _layernorm_ref(x, params["ln1g"], params["ln1b"])
        q = h @ params["wq"]; k = h @ params["wk"]; v = h @ params["wv"]
        w = (q @ k.T) * (HEADSIZ ** -0.5)
        T = x.shape[0]
        mask = jnp.tril(jnp.ones((T, T), bool))
        w = jnp.where(mask, w, -jnp.inf)
        w = jax.nn.softmax(w, axis=-1)
        x = x + (w @ v) @ params["wproj"] + params["bproj"]
        h2 = _layernorm_ref(x, params["ln2g"], params["ln2b"])
        ff = _gelu_tanh(h2 @ params["wfc1"] + params["bfc1"])
        x = x + ff @ params["wfc2"] + params["bfc2"]
        xf = _layernorm_ref(x, params["lnfg"], params["lnfb"])
        return xf @ params["wlm"] + params["blm"]
    T = ix.shape[1]
    x = params["wte"][ix] + params["wpe"][:T][None]
    return jax.vmap(one_seq)(x.astype(jnp.float32))


if __name__ == "__main__":
    key = jax.random.PRNGKey(0)
    pkey, ikey = jax.random.split(key)
    params = init_params(pkey)
    pp = prepare_params(params)   # one-time offline padding / fusion

    B, T = 2, 8
    ix = jax.random.randint(ikey, (B, T), 0, NEW_VOCAB_SIZ, dtype=jnp.int32)

    logits = gpt_forward(ix, pp)
    logits = jax.block_until_ready(logits)
    assert logits.shape == (B, T, VOCABSIZ), logits.shape

    ref = reference_forward(ix, params)
    np.testing.assert_allclose(np.asarray(logits), np.asarray(ref), rtol=2e-4, atol=2e-4)

    # TODO(synk): cross-entropy loss branch (targt is not None) and generate() sampling
    # are not part of the kernel hot path and are left to plain JAX if needed.
    print("KERNEL_OK")
</pallas_src>

<mosaic_0001>
module attributes {stable_mosaic.version = 11 : i64} {
  func.func @gpt_kernel(%arg0: i32, %arg1: memref<16x1xi32, #tpu.memory_space<vmem>>, %arg2: memref<16x16xf32, #tpu.memory_space<vmem>>, %arg3: memref<512x128xf32, #tpu.memory_space<vmem>>, %arg4: memref<128x128xf32, #tpu.memory_space<vmem>>, %arg5: memref<128x384xf32, #tpu.memory_space<vmem>>, %arg6: memref<128x128xf32, #tpu.memory_space<vmem>>, %arg7: memref<1x128xf32, #tpu.memory_space<vmem>>, %arg8: memref<1x128xf32, #tpu.memory_space<vmem>>, %arg9: memref<1x128xf32, #tpu.memory_space<vmem>>, %arg10: memref<1x128xf32, #tpu.memory_space<vmem>>, %arg11: memref<1x128xf32, #tpu.memory_space<vmem>>, %arg12: memref<128x256xf32, #tpu.memory_space<vmem>>, %arg13: memref<1x256xf32, #tpu.memory_space<vmem>>, %arg14: memref<256x128xf32, #tpu.memory_space<vmem>>, %arg15: memref<1x128xf32, #tpu.memory_space<vmem>>, %arg16: memref<1x128xf32, #tpu.memory_space<vmem>>, %arg17: memref<1x128xf32, #tpu.memory_space<vmem>>, %arg18: memref<128x384xf32, #tpu.memory_space<vmem>>, %arg19: memref<1x384xf32, #tpu.memory_space<vmem>>, %arg20: memref<16x384xf32, #tpu.memory_space<vmem>>) attributes {dimension_semantics = [#tpu.dimension_semantics<arbitrary>], iteration_bounds = array<i64: 1>, scalar_prefetch = 0 : i64, scratch_operands = 0 : i64, tpu.core_type = #tpu.core_type<tc>, window_params = [{pipeline_mode = #tpu.pipeline_mode<synchronous>, transform_indices = @transform_0, window_bounds = array<i64: 16, 1>}, {pipeline_mode = #tpu.pipeline_mode<synchronous>, transform_indices = @transform_1, window_bounds = array<i64: 16, 16>}, {pipeline_mode = #tpu.pipeline_mode<synchronous>, transform_indices = @transform_2, window_bounds = array<i64: 512, 128>}, {pipeline_mode = #tpu.pipeline_mode<synchronous>, transform_indices = @transform_3, window_bounds = array<i64: 128, 128>}, {pipeline_mode = #tpu.pipeline_mode<synchronous>, transform_indices = @transform_4, window_bounds = array<i64: 128, 384>}, {pipeline_mode = #tpu.pipeline_mode<synchronous>, transform_indices = @transform_5, window_bounds = array<i64: 128, 128>}, {pipeline_mode = #tpu.pipeline_mode<synchronous>, transform_indices = @transform_6, window_bounds = array<i64: 1, 128>}, {pipeline_mode = #tpu.pipeline_mode<synchronous>, transform_indices = @transform_7, window_bounds = array<i64: 1, 128>}, {pipeline_mode = #tpu.pipeline_mode<synchronous>, transform_indices = @transform_8, window_bounds = array<i64: 1, 128>}, {pipeline_mode = #tpu.pipeline_mode<synchronous>, transform_indices = @transform_9, window_bounds = array<i64: 1, 128>}, {pipeline_mode = #tpu.pipeline_mode<synchronous>, transform_indices = @transform_10, window_bounds = array<i64: 1, 128>}, {pipeline_mode = #tpu.pipeline_mode<synchronous>, transform_indices = @transform_11, window_bounds = array<i64: 128, 256>}, {pipeline_mode = #tpu.pipeline_mode<synchronous>, transform_indices = @transform_12, window_bounds = array<i64: 1, 256>}, {pipeline_mode = #tpu.pipeline_mode<synchronous>, transform_indices = @transform_13, window_bounds = array<i64: 256, 128>}, {pipeline_mode = #tpu.pipeline_mode<synchronous>, transform_indices = @transform_14, window_bounds = array<i64: 1, 128>}, {pipeline_mode = #tpu.pipeline_mode<synchronous>, transform_indices = @transform_15, window_bounds = array<i64: 1, 128>}, {pipeline_mode = #tpu.pipeline_mode<synchronous>, transform_indices = @transform_16, window_bounds = array<i64: 1, 128>}, {pipeline_mode = #tpu.pipeline_mode<synchronous>, transform_indices = @transform_17, window_bounds = array<i64: 128, 384>}, {pipeline_mode = #tpu.pipeline_mode<synchronous>, transform_indices = @transform_18, window_bounds = array<i64: 1, 384>}, {pipeline_mode = #tpu.pipeline_mode<synchronous>, transform_indices = @transform_19, window_bounds = array<i64: 16, 384>}]} {
    %c0 = arith.constant 0 : index
    %c0_0 = arith.constant 0 : index
    %0 = vector.load %arg1[%c0, %c0_0] : memref<16x1xi32, #tpu.memory_space<vmem>>, vector<16x1xi32>
    %1 = tpu.iota {dimensions = array<i32: 1>} : vector<16x512xi32>
    %2 = vector.broadcast %0 : vector<16x1xi32> to vector<16x512xi32>
    %3 = arith.cmpi eq, %1, %2 : vector<16x512xi32>
    %4 = arith.extui %3 : vector<16x512xi1> to vector<16x512xi32>
    %5 = arith.sitofp %4 : vector<16x512xi32> to vector<16x512xf32>
    %c0_1 = arith.constant 0 : index
    %c0_2 = arith.constant 0 : index
    %6 = vector.load %arg3[%c0_1, %c0_2] : memref<512x128xf32, #tpu.memory_space<vmem>>, vector<512x128xf32>
    %cst = arith.constant dense<0.000000e+00> : vector<16x128xf32>
    %7 = tpu.matmul %5, %6, %cst {dimension_numbers = #tpu.dot_dimension_numbers<[1], [0], [0], [1], [0, 0, 1, 1], [], []>} : vector<16x512xf32>, vector<512x128xf32>, vector<16x128xf32> -> vector<16x128xf32>
    %c0_3 = arith.constant 0 : index
    %c0_4 = arith.constant 0 : index
    %8 = vector.load %arg4[%c0_3, %c0_4] : memref<128x128xf32, #tpu.memory_space<vmem>>, vector<8x128xf32>
    %9 = tpu.concatenate %8, %8 in 0 : vector<8x128xf32>, vector<8x128xf32> -> vector<16x128xf32>
    %10 = arith.addf %7, %9 : vector<16x128xf32>
    %c0_5 = arith.constant 0 : index
    %c0_6 = arith.constant 0 : index
    %11 = vector.load %arg8[%c0_5, %c0_6] : memref<1x128xf32, #tpu.memory_space<vmem>>, vector<1x128xf32>
    %c0_7 = arith.constant 0 : index
    %c0_8 = arith.constant 0 : index
    %12 = vector.load %arg9[%c0_7, %c0_8] : memref<1x128xf32, #tpu.memory_space<vmem>>, vector<1x128xf32>
    %cst_9 = arith.constant dense<0.000000e+00> : vector<16xf32>
    %13 = vector.multi_reduction <add>, %10, %cst_9 [1] : vector<16x128xf32> to vector<16xf32>
    %14 = vector.shape_cast %13 : vector<16xf32> to vector<16x1xf32>
    %cst_10 = arith.constant 0.0238095243 : f32
    %15 = vector.broadcast %cst_10 : f32 to vector<16x1xf32>
    %16 = arith.mulf %14, %15 : vector<16x1xf32>
    %17 = arith.mulf %10, %10 : vector<16x128xf32>
    %cst_11 = arith.constant dense<0.000000e+00> : vector<16xf32>
    %18 = vector.multi_reduction <add>, %17, %cst_11 [1] : vector<16x128xf32> to vector<16xf32>
    %19 = vector.shape_cast %18 : vector<16xf32> to vector<16x1xf32>
    %cst_12 = arith.constant 0.0238095243 : f32
    %20 = vector.broadcast %cst_12 : f32 to vector<16x1xf32>
    %21 = arith.mulf %19, %20 : vector<16x1xf32>
    %22 = arith.mulf %16, %16 : vector<16x1xf32>
    %23 = arith.subf %21, %22 : vector<16x1xf32>
    %24 = vector.broadcast %16 : vector<16x1xf32> to vector<16x128xf32>
    %25 = arith.subf %10, %24 : vector<16x128xf32>
    %cst_13 = arith.constant 9.99999974E-6 : f32
    %26 = vector.broadcast %cst_13 : f32 to vector<16x1xf32>
    %27 = arith.addf %23, %26 : vector<16x1xf32>
    %28 = math.rsqrt %27 : vector<16x1xf32>
    %29 = vector.broadcast %28 : vector<16x1xf32> to vector<16x128xf32>
    %30 = arith.mulf %25, %29 : vector<16x128xf32>
    %31 = vector.broadcast %11 : vector<1x128xf32> to vector<16x128xf32>
    %32 = arith.mulf %30, %31 : vector<16x128xf32>
    %33 = vector.broadcast %12 : vector<1x128xf32> to vector<16x128xf32>
    %34 = arith.addf %32, %33 : vector<16x128xf32>
    %c0_14 = arith.constant 0 : index
    %c0_15 = arith.constant 0 : index
    %35 = vector.load %arg5[%c0_14, %c0_15] : memref<128x384xf32, #tpu.memory_space<vmem>>, vector<128x384xf32>
    %cst_16 = arith.constant dense<0.000000e+00> : vector<16x384xf32>
    %36 = tpu.matmul %34, %35, %cst_16 {dimension_numbers = #tpu.dot_dimension_numbers<[1], [0], [0], [1], [0, 0, 1, 1], [], []>} : vector<16x128xf32>, vector<128x384xf32>, vector<16x384xf32> -> vector<16x384xf32>
    %37 = vector.extract_strided_slice %36 {offsets = [0, 0], sizes = [16, 128], strides = [1, 1]} : vector<16x384xf32> to vector<16x128xf32>
    %38 = vector.extract_strided_slice %36 {offsets = [0, 128], sizes = [16, 128], strides = [1, 1]} : vector<16x384xf32> to vector<16x128xf32>
    %39 = vector.extract_strided_slice %36 {offsets = [0, 256], sizes = [16, 128], strides = [1, 1]} : vector<16x384xf32> to vector<16x128xf32>
    %cst_17 = arith.constant dense<0.000000e+00> : vector<16x16xf32>
    %40 = tpu.matmul %37, %38, %cst_17 {dimension_numbers = #tpu.dot_dimension_numbers<[1], [1], [0], [0], [0, 0, 1, 0], [], []>} : vector<16x128xf32>, vector<16x128xf32>, vector<16x16xf32> -> vector<16x16xf32>
    %c0_18 = arith.constant 0 : index
    %c0_19 = arith.constant 0 : index
    %41 = vector.load %arg2[%c0_18, %c0_19] : memref<16x16xf32, #tpu.memory_space<vmem>>, vector<16x16xf32>
    %42 = arith.addf %40, %41 : vector<16x16xf32>
    %cst_20 = arith.constant dense<0xFF800000> : vector<16xf32>
    %43 = vector.multi_reduction <maximumf>, %42, %cst_20 [1] : vector<16x16xf32> to vector<16xf32>
    %44 = vector.shape_cast %43 : vector<16xf32> to vector<16x1xf32>
    %45 = vector.broadcast %44 : vector<16x1xf32> to vector<16x16xf32>
    %46 = arith.subf %42, %45 : vector<16x16xf32>
    %47 = math.exp %46 : vector<16x16xf32>
    %cst_21 = arith.constant dense<0.000000e+00> : vector<16xf32>
    %48 = vector.multi_reduction <add>, %47, %cst_21 [1] : vector<16x16xf32> to vector<16xf32>
    %49 = vector.shape_cast %48 : vector<16xf32> to vector<16x1xf32>
    %cst_22 = arith.constant dense<0.000000e+00> : vector<16x128xf32>
    %50 = tpu.matmul %47, %39, %cst_22 {dimension_numbers = #tpu.dot_dimension_numbers<[1], [0], [0], [1], [0, 0, 1, 1], [], []>} : vector<16x16xf32>, vector<16x128xf32>, vector<16x128xf32> -> vector<16x128xf32>
    %51 = tpu.reciprocal %49 : vector<16x1xf32> -> vector<16x1xf32>
    %52 = vector.broadcast %51 : vector<16x1xf32> to vector<16x128xf32>
    %53 = arith.mulf %50, %52 : vector<16x128xf32>
    %c0_23 = arith.constant 0 : index
    %c0_24 = arith.constant 0 : index
    %54 = vector.load %arg6[%c0_23, %c0_24] : memref<128x128xf32, #tpu.memory_space<vmem>>, vector<128x128xf32>
    %cst_25 = arith.constant dense<0.000000e+00> : vector<16x128xf32>
    %55 = tpu.matmul %53, %54, %cst_25 {dimension_numbers = #tpu.dot_dimension_numbers<[1], [0], [0], [1], [0, 0, 1, 1], [], []>} : vector<16x128xf32>, vector<128x128xf32>, vector<16x128xf32> -> vector<16x128xf32>
    %c0_26 = arith.constant 0 : index
    %c0_27 = arith.constant 0 : index
    %56 = vector.load %arg7[%c0_26, %c0_27] : memref<1x128xf32, #tpu.memory_space<vmem>>, vector<1x128xf32>
    %57 = vector.broadcast %56 : vector<1x128xf32> to vector<16x128xf32>
    %58 = arith.addf %55, %57 : vector<16x128xf32>
    %59 = arith.addf %10, %58 : vector<16x128xf32>
    %c0_28 = arith.constant 0 : index
    %c0_29 = arith.constant 0 : index
    %60 = vector.load %arg10[%c0_28, %c0_29] : memref<1x128xf32, #tpu.memory_space<vmem>>, vector<1x128xf32>
    %c0_30 = arith.constant 0 : index
    %c0_31 = arith.constant 0 : index
    %61 = vector.load %arg11[%c0_30, %c0_31] : memref<1x128xf32, #tpu.memory_space<vmem>>, vector<1x128xf32>
    %cst_32 = arith.constant dense<0.000000e+00> : vector<16xf32>
    %62 = vector.multi_reduction <add>, %59, %cst_32 [1] : vector<16x128xf32> to vector<16xf32>
    %63 = vector.shape_cast %62 : vector<16xf32> to vector<16x1xf32>
    %cst_33 = arith.constant 0.0238095243 : f32
    %64 = vector.broadcast %cst_33 : f32 to vector<16x1xf32>
    %65 = arith.mulf %63, %64 : vector<16x1xf32>
    %66 = arith.mulf %59, %59 : vector<16x128xf32>
    %cst_34 = arith.constant dense<0.000000e+00> : vector<16xf32>
    %67 = vector.multi_reduction <add>, %66, %cst_34 [1] : vector<16x128xf32> to vector<16xf32>
    %68 = vector.shape_cast %67 : vector<16xf32> to vector<16x1xf32>
    %cst_35 = arith.constant 0.0238095243 : f32
    %69 = vector.broadcast %cst_35 : f32 to vector<16x1xf32>
    %70 = arith.mulf %68, %69 : vector<16x1xf32>
    %71 = arith.mulf %65, %65 : vector<16x1xf32>
    %72 = arith.subf %70, %71 : vector<16x1xf32>
    %73 = vector.broadcast %65 : vector<16x1xf32> to vector<16x128xf32>
    %74 = arith.subf %59, %73 : vector<16x128xf32>
    %cst_36 = arith.constant 9.99999974E-6 : f32
    %75 = vector.broadcast %cst_36 : f32 to vector<16x1xf32>
    %76 = arith.addf %72, %75 : vector<16x1xf32>
    %77 = math.rsqrt %76 : vector<16x1xf32>
    %78 = vector.broadcast %77 : vector<16x1xf32> to vector<16x128xf32>
    %79 = arith.mulf %74, %78 : vector<16x128xf32>
    %80 = vector.broadcast %60 : vector<1x128xf32> to vector<16x128xf32>
    %81 = arith.mulf %79, %80 : vector<16x128xf32>
    %82 = vector.broadcast %61 : vector<1x128xf32> to vector<16x128xf32>
    %83 = arith.addf %81, %82 : vector<16x128xf32>
    %c0_37 = arith.constant 0 : index
    %c0_38 = arith.constant 0 : index
    %84 = vector.load %arg12[%c0_37, %c0_38] : memref<128x256xf32, #tpu.memory_space<vmem>>, vector<128x256xf32>
    %cst_39 = arith.constant dense<0.000000e+00> : vector<16x256xf32>
    %85 = tpu.matmul %83, %84, %cst_39 {dimension_numbers = #tpu.dot_dimension_numbers<[1], [0], [0], [1], [0, 0, 1, 1], [], []>} : vector<16x128xf32>, vector<128x256xf32>, vector<16x256xf32> -> vector<16x256xf32>
    %c0_40 = arith.constant 0 : index
    %c0_41 = arith.constant 0 : index
    %86 = vector.load %arg13[%c0_40, %c0_41] : memref<1x256xf32, #tpu.memory_space<vmem>>, vector<1x256xf32>
    %87 = vector.broadcast %86 : vector<1x256xf32> to vector<16x256xf32>
    %88 = arith.addf %85, %87 : vector<16x256xf32>
    %cst_42 = arith.constant 0.636619746 : f32
    %89 = math.sqrt %cst_42 : f32
    %cst_43 = arith.constant 5.000000e-01 : f32
    %90 = vector.broadcast %cst_43 : f32 to vector<16x256xf32>
    %91 = arith.mulf %90, %88 : vector<16x256xf32>
    %cst_44 = arith.constant 4.471500e-02 : f32
    %92 = vector.broadcast %cst_44 : f32 to vector<16x256xf32>
    %93 = arith.mulf %92, %88 : vector<16x256xf32>
    %94 = arith.mulf %93, %88 : vector<16x256xf32>
    %95 = arith.mulf %94, %88 : vector<16x256xf32>
    %96 = arith.addf %88, %95 : vector<16x256xf32>
    %97 = vector.broadcast %89 : f32 to vector<16x256xf32>
    %98 = arith.mulf %97, %96 : vector<16x256xf32>
    %99 = math.tanh %98 : vector<16x256xf32>
    %cst_45 = arith.constant 1.000000e+00 : f32
    %100 = vector.broadcast %cst_45 : f32 to vector<16x256xf32>
    %101 = arith.addf %100, %99 : vector<16x256xf32>
    %102 = arith.mulf %91, %101 : vector<16x256xf32>
    %c0_46 = arith.constant 0 : index
    %c0_47 = arith.constant 0 : index
    %103 = vector.load %arg14[%c0_46, %c0_47] : memref<256x128xf32, #tpu.memory_space<vmem>>, vector<256x128xf32>
    %cst_48 = arith.constant dense<0.000000e+00> : vector<16x128xf32>
    %104 = tpu.matmul %102, %103, %cst_48 {dimension_numbers = #tpu.dot_dimension_numbers<[1], [0], [0], [1], [0, 0, 1, 1], [], []>} : vector<16x256xf32>, vector<256x128xf32>, vector<16x128xf32> -> vector<16x128xf32>
    %c0_49 = arith.constant 0 : index
    %c0_50 = arith.constant 0 : index
    %105 = vector.load %arg15[%c0_49, %c0_50] : memref<1x128xf32, #tpu.memory_space<vmem>>, vector<1x128xf32>
    %106 = vector.broadcast %105 : vector<1x128xf32> to vector<16x128xf32>
    %107 = arith.addf %104, %106 : vector<16x128xf32>
    %108 = arith.addf %59, %107 : vector<16x128xf32>
    %c0_51 = arith.constant 0 : index
    %c0_52 = arith.constant 0 : index
    %109 = vector.load %arg16[%c0_51, %c0_52] : memref<1x128xf32, #tpu.memory_space<vmem>>, vector<1x128xf32>
    %c0_53 = arith.constant 0 : index
    %c0_54 = arith.constant 0 : index
    %110 = vector.load %arg17[%c0_53, %c0_54] : memref<1x128xf32, #tpu.memory_space<vmem>>, vector<1x128xf32>
    %cst_55 = arith.constant dense<0.000000e+00> : vector<16xf32>
    %111 = vector.multi_reduction <add>, %108, %cst_55 [1] : vector<16x128xf32> to vector<16xf32>
    %112 = vector.shape_cast %111 : vector<16xf32> to vector<16x1xf32>
    %cst_56 = arith.constant 0.0238095243 : f32
    %113 = vector.broadcast %cst_56 : f32 to vector<16x1xf32>
    %114 = arith.mulf %112, %113 : vector<16x1xf32>
    %115 = arith.mulf %108, %108 : vector<16x128xf32>
    %cst_57 = arith.constant dense<0.000000e+00> : vector<16xf32>
    %116 = vector.multi_reduction <add>, %115, %cst_57 [1] : vector<16x128xf32> to vector<16xf32>
    %117 = vector.shape_cast %116 : vector<16xf32> to vector<16x1xf32>
    %cst_58 = arith.constant 0.0238095243 : f32
    %118 = vector.broadcast %cst_58 : f32 to vector<16x1xf32>
    %119 = arith.mulf %117, %118 : vector<16x1xf32>
    %120 = arith.mulf %114, %114 : vector<16x1xf32>
    %121 = arith.subf %119, %120 : vector<16x1xf32>
    %122 = vector.broadcast %114 : vector<16x1xf32> to vector<16x128xf32>
    %123 = arith.subf %108, %122 : vector<16x128xf32>
    %cst_59 = arith.constant 9.99999974E-6 : f32
    %124 = vector.broadcast %cst_59 : f32 to vector<16x1xf32>
    %125 = arith.addf %121, %124 : vector<16x1xf32>
    %126 = math.rsqrt %125 : vector<16x1xf32>
    %127 = vector.broadcast %126 : vector<16x1xf32> to vector<16x128xf32>
    %128 = arith.mulf %123, %127 : vector<16x128xf32>
    %129 = vector.broadcast %109 : vector<1x128xf32> to vector<16x128xf32>
    %130 = arith.mulf %128, %129 : vector<16x128xf32>
    %131 = vector.broadcast %110 : vector<1x128xf32> to vector<16x128xf32>
    %132 = arith.addf %130, %131 : vector<16x128xf32>
    %c0_60 = arith.constant 0 : index
    %c0_61 = arith.constant 0 : index
    %133 = vector.load %arg18[%c0_60, %c0_61] : memref<128x384xf32, #tpu.memory_space<vmem>>, vector<128x384xf32>
    %cst_62 = arith.constant dense<0.000000e+00> : vector<16x384xf32>
    %134 = tpu.matmul %132, %133, %cst_62 {dimension_numbers = #tpu.dot_dimension_numbers<[1], [0], [0], [1], [0, 0, 1, 1], [], []>} : vector<16x128xf32>, vector<128x384xf32>, vector<16x384xf32> -> vector<16x384xf32>
    %c0_63 = arith.constant 0 : index
    %c0_64 = arith.constant 0 : index
    %135 = vector.load %arg19[%c0_63, %c0_64] : memref<1x384xf32, #tpu.memory_space<vmem>>, vector<1x384xf32>
    %136 = vector.broadcast %135 : vector<1x384xf32> to vector<16x384xf32>
    %137 = arith.addf %134, %136 : vector<16x384xf32>
    %c0_65 = arith.constant 0 : index
    %c0_66 = arith.constant 0 : index
    %138 = vector.load %arg20[%c0_65, %c0_66] : memref<16x384xf32, #tpu.memory_space<vmem>>, vector<16x384xf32>
    tpu.vector_store %arg20[%c0_65, %c0_66], %137 {strides = array<i32>} : memref<16x384xf32, #tpu.memory_space<vmem>>, vector<16x384xf32>,
    return
  }
  func.func @transform_0(%arg0: i32) -> (i32, i32) {
    %c0_i32 = arith.constant 0 : i32
    %c0_i32_0 = arith.constant 0 : i32
    %c0_i32_1 = arith.constant 0 : i32
    return %c0_i32, %c0_i32_0 : i32, i32
  }
  func.func @transform_1(%arg0: i32) -> (i32, i32) {
    %c0_i32 = arith.constant 0 : i32
    %c0_i32_0 = arith.constant 0 : i32
    %c0_i32_1 = arith.constant 0 : i32
    return %c0_i32, %c0_i32_0 : i32, i32
  }
  func.func @transform_2(%arg0: i32) -> (i32, i32) {
    %c0_i32 = arith.constant 0 : i32
    %c0_i32_0 = arith.constant 0 : i32
    %c0_i32_1 = arith.constant 0 : i32
    return %c0_i32, %c0_i32_0 : i32, i32
  }
  func.func @transform_3(%arg0: i32) -> (i32, i32) {
    %c0_i32 = arith.constant 0 : i32
    %c0_i32_0 = arith.constant 0 : i32
    %c0_i32_1 = arith.constant 0 : i32
    return %c0_i32, %c0_i32_0 : i32, i32
  }
  func.func @transform_4(%arg0: i32) -> (i32, i32) {
    %c0_i32 = arith.constant 0 : i32
    %c0_i32_0 = arith.constant 0 : i32
    %c0_i32_1 = arith.constant 0 : i32
    return %c0_i32, %c0_i32_0 : i32, i32
  }
  func.func @transform_5(%arg0: i32) -> (i32, i32) {
    %c0_i32 = arith.constant 0 : i32
    %c0_i32_0 = arith.constant 0 : i32
    %c0_i32_1 = arith.constant 0 : i32
    return %c0_i32, %c0_i32_0 : i32, i32
  }
  func.func @transform_6(%arg0: i32) -> (i32, i32) {
    %c0_i32 = arith.constant 0 : i32
    %c0_i32_0 = arith.constant 0 : i32
    %c0_i32_1 = arith.constant 0 : i32
    return %c0_i32, %c0_i32_0 : i32, i32
  }
  func.func @transform_7(%arg0: i32) -> (i32, i32) {
    %c0_i32 = arith.constant 0 : i32
    %c0_i32_0 = arith.constant 0 : i32
    %c0_i32_1 = arith.constant 0 : i32
    return %c0_i32, %c0_i32_0 : i32, i32
  }
  func.func @transform_8(%arg0: i32) -> (i32, i32) {
    %c0_i32 = arith.constant 0 : i32
    %c0_i32_0 = arith.constant 0 : i32
    %c0_i32_1 = arith.constant 0 : i32
    return %c0_i32, %c0_i32_0 : i32, i32
  }
  func.func @transform_9(%arg0: i32) -> (i32, i32) {
    %c0_i32 = arith.constant 0 : i32
    %c0_i32_0 = arith.constant 0 : i32
    %c0_i32_1 = arith.constant 0 : i32
    return %c0_i32, %c0_i32_0 : i32, i32
  }
  func.func @transform_10(%arg0: i32) -> (i32, i32) {
    %c0_i32 = arith.constant 0 : i32
    %c0_i32_0 = arith.constant 0 : i32
    %c0_i32_1 = arith.constant 0 : i32
    return %c0_i32, %c0_i32_0 : i32, i32
  }
  func.func @transform_11(%arg0: i32) -> (i32, i32) {
    %c0_i32 = arith.constant 0 : i32
    %c0_i32_0 = arith.constant 0 : i32
    %c0_i32_1 = arith.constant 0 : i32
    return %c0_i32, %c0_i32_0 : i32, i32
  }
  func.func @transform_12(%arg0: i32) -> (i32, i32) {
    %c0_i32 = arith.constant 0 : i32
    %c0_i32_0 = arith.constant 0 : i32
    %c0_i32_1 = arith.constant 0 : i32
    return %c0_i32, %c0_i32_0 : i32, i32
  }
  func.func @transform_13(%arg0: i32) -> (i32, i32) {
    %c0_i32 = arith.constant 0 : i32
    %c0_i32_0 = arith.constant 0 : i32
    %c0_i32_1 = arith.constant 0 : i32
    return %c0_i32, %c0_i32_0 : i32, i32
  }
  func.func @transform_14(%arg0: i32) -> (i32, i32) {
    %c0_i32 = arith.constant 0 : i32
    %c0_i32_0 = arith.constant 0 : i32
    %c0_i32_1 = arith.constant 0 : i32
    return %c0_i32, %c0_i32_0 : i32, i32
  }
  func.func @transform_15(%arg0: i32) -> (i32, i32) {
    %c0_i32 = arith.constant 0 : i32
    %c0_i32_0 = arith.constant 0 : i32
    %c0_i32_1 = arith.constant 0 : i32
    return %c0_i32, %c0_i32_0 : i32, i32
  }
  func.func @transform_16(%arg0: i32) -> (i32, i32) {
    %c0_i32 = arith.constant 0 : i32
    %c0_i32_0 = arith.constant 0 : i32
    %c0_i32_1 = arith.constant 0 : i32
    return %c0_i32, %c0_i32_0 : i32, i32
  }
  func.func @transform_17(%arg0: i32) -> (i32, i32) {
    %c0_i32 = arith.constant 0 : i32
    %c0_i32_0 = arith.constant 0 : i32
    %c0_i32_1 = arith.constant 0 : i32
    return %c0_i32, %c0_i32_0 : i32, i32
  }
  func.func @transform_18(%arg0: i32) -> (i32, i32) {
    %c0_i32 = arith.constant 0 : i32
    %c0_i32_0 = arith.constant 0 : i32
    %c0_i32_1 = arith.constant 0 : i32
    return %c0_i32, %c0_i32_0 : i32, i32
  }
  func.func @transform_19(%arg0: i32) -> (i32, i32) {
    %c0_i32 = arith.constant 0 : i32
    %c0_i32_0 = arith.constant 0 : i32
    %c0_i32_1 = arith.constant 0 : i32
    return %c0_i32, %c0_i32_0 : i32, i32
  }
}

</mosaic_0001>

<bundles_post_ra>
// kernel: tpu_custom_call.1
= control target key start
LH: loop header
LB: loop body
LE: loop exit
PB: predicated region body
PF: predicated region fallthrough
CT: control target
= control target key end

     0   :  { %s2745_s0 = inlined_call_operand.vmem [shape: s32[16,1], index: 0, kind: input, shape index: {}]   ;;  %s2746_s1 = inlined_call_operand.vmem [shape: f32[16,16], index: 1, kind: input, shape index: {}]   ;;  %s2747_s2 = inlined_call_operand.hbm [shape: f32[512,128], index: 2, kind: input, shape index: {}]   ;;  %s2748_s3 = inlined_call_operand.hbm [shape: f32[128,128], index: 3, kind: input, shape index: {}]   ;;  %s2749_s4 = inlined_call_operand.hbm [shape: f32[128,384], index: 4, kind: input, shape index: {}]   ;;  %s2750_s5 = inlined_call_operand.hbm [shape: f32[128,128], index: 5, kind: input, shape index: {}]   ;;  %s2751_s6 = inlined_call_operand.vmem [shape: f32[1,128], index: 6, kind: input, shape index: {}]   ;;  %s2752_s7 = inlined_call_operand.vmem [shape: f32[1,128], index: 7, kind: input, shape index: {}]   ;;  %s2753_s8 = inlined_call_operand.vmem [shape: f32[1,128], index: 8, kind: input, shape index: {}]   ;;  %s2754_s9 = inlined_call_operand.vmem [shape: f32[1,128], index: 9, kind: input, shape index: {}]   ;;  %s2755_s10 = inlined_call_operand.vmem [shape: f32[1,128], index: 10, kind: input, shape index: {}]   ;;  %s2756_s11 = inlined_call_operand.hbm [shape: f32[128,256], index: 11, kind: input, shape index: {}]   ;;  %s2757_s12 = inlined_call_operand.vmem [shape: f32[1,256], index: 12, kind: input, shape index: {}]   ;;  %s2758_s13 = inlined_call_operand.hbm [shape: f32[256,128], index: 13, kind: input, shape index: {}]   ;;  %s2759_s14 = inlined_call_operand.vmem [shape: f32[1,128], index: 14, kind: input, shape index: {}]   ;;  %s2760_s15 = inlined_call_operand.vmem [shape: f32[1,128], index: 15, kind: input, shape index: {}]   ;;  %s2761_s16 = inlined_call_operand.vmem [shape: f32[1,128], index: 16, kind: input, shape index: {}]   ;;  %s2762_s17 = inlined_call_operand.hbm [shape: f32[128,384], index: 17, kind: input, shape index: {}]   ;;  %s2763_s18 = inlined_call_operand.vmem [shape: f32[1,384], index: 18, kind: input, shape index: {}]   ;;  %s2764_s19 = inlined_call_operand.hbm [shape: f32[16,384], index: 19, kind: output, shape index: {}]  }
   0x1   :  { %2770 = sst [smem:[#allocation20_spill]] %s2745_s0 }
   0x2   :  { %2771 = sst [smem:[#allocation21_spill]] %s2746_s1 }
   0x3   :  { %2772 = sst [smem:[#allocation22_spill]] %s2747_s2 }
   0x4   :  { %2773 = sst [smem:[#allocation23_spill]] %s2748_s3 }
   0x5   :  { %2774 = sst [smem:[#allocation24_spill]] %s2764_s19 }
   0x6   :  { %24 = vsyncpa [#allocation3], 0 }
   0x7   :  { %25 = vsyncpa [#allocation6], 0 }
   0x8   :  { %26 = vsyncpa [#allocation9], 0 }
   0x9   :  { %27 = vsyncpa [#allocation12], 0 }
   0xa   :  { %28 = vsyncpa [#allocation4], 0  ;;  %s2388_s0 = smov [#allocation5]   ;;  %s2389_s20 = smov [#allocation8]  }
   0xb   :  { %s50_s30 = sshll.u32 %s2388_s0, 4  ;;  %s74_s21 = sshll.u32 %s2389_s20, 4  ;;  %s51_s30 = int_to_ptr.vmem [resolvable:$true] %s50_s30  ;;  %s2505_s21 = int_to_ptr.vmem [resolvable:$true] %s74_s21 }
   0xc   :  { %s2775_s2 = sld [smem:[#allocation23_spill]] }
  0x12   :  { %s2202_s23 = scalar_lea.hbm %s2775_s2, 2048 }
  0x13   :  { %p2203_p0 = scmp.ne.s32.totalorder %s2775_s2, %s2202_s23  ;;  %p2206_p1 = scmp.lt.u32.totalorder %s2202_s23, %s2775_s2 }
  0x15   :  { %p2208_p2 = pnand %p2206_p1, %p2203_p0 }
  0x17   :  { %2211 = shalt.err (!%p2208_p2)
}
  0x18   :  { %s2212_s27 = scalar_lea.vmem %s51_s30, 2048  ;;  %p2217_p4 = scmp.lt.s32.totalorder %s51_s30, %s51_s30 }
  0x19   :  { %p2213_p3 = scmp.ne.s32.totalorder %s51_s30, %s2212_s27  ;;  %p2218_p5 = scmp.lt.s32.totalorder %s2212_s27, %s2212_s27 }
  0x1b   :  { %p2219_p6 = por %p2218_p5, %p2217_p4 }
  0x1d   :  { %p2220_p7 = pnand %p2219_p6, %p2213_p3 }
  0x1f   :  { %2223 = shalt.err (!%p2220_p7)
}
  0x20   :  { %s2390_s28 = smov 128   ;;  %s2391_s29 = smov 8  }
  0x21   :  { %56 = dma.hbm_to_vmem [thread:$0]  %s2775_s2, 2048, %s51_s30, [#allocation6], %s2390_s28, %s2390_s28, %s2391_s29  }
  0x22   :  { %s2224_s23 = scalar_lea.hbm %s2750_s5, 2048 }
  0x23   :  { %p2225_p8 = scmp.ne.s32.totalorder %s2750_s5, %s2224_s23  ;;  %p2228_p9 = scmp.lt.u32.totalorder %s2224_s23, %s2750_s5 }
  0x25   :  { %p2230_p10 = pnand %p2228_p9, %p2225_p8 }
  0x27   :  { %2233 = shalt.err (!%p2230_p10)
}
  0x28   :  { %s2234_s27 = scalar_lea.vmem %s2505_s21, 2048  ;;  %p2239_p12 = scmp.lt.s32.totalorder %s2505_s21, %s2505_s21 }
  0x29   :  { %p2235_p11 = scmp.ne.s32.totalorder %s2505_s21, %s2234_s27  ;;  %p2240_p13 = scmp.lt.s32.totalorder %s2234_s27, %s2234_s27 }
  0x2b   :  { %p2241_p0 = por %p2240_p13, %p2239_p12 }
  0x2d   :  { %p2242_p1 = pnand %p2241_p0, %p2235_p11 }
  0x2f   :  { %2245 = shalt.err (!%p2242_p1)
}
  0x30   :  { %80 = dma.hbm_to_vmem [thread:$0]  %s2750_s5, 2048, %s2505_s21, [#allocation9], %s2390_s28, %s2390_s28, %s2391_s29  }
  0x31   :  { %s2392_s0 = smov [#allocation11]   ;;  %s2393_s1 = smov [#allocation2]  }
  0x32   :  { %s110_s20 = sshll.u32 %s2392_s0, 4  ;;  %s38_s22 = sshll.u32 %s2393_s1, 4  ;;  %s111_s20 = int_to_ptr.vmem [resolvable:$true] %s110_s20  ;;  %s2542_s22 = int_to_ptr.vmem [resolvable:$true] %s38_s22 }
  0x33   :  { %s2246_s25 = scalar_lea.hbm %s2758_s13, 4096 }
  0x34   :  { %p2247_p2 = scmp.ne.s32.totalorder %s2758_s13, %s2246_s25  ;;  %p2250_p3 = scmp.lt.u32.totalorder %s2246_s25, %s2758_s13 }
  0x36   :  { %p2252_p4 = pnand %p2250_p3, %p2247_p2 }
  0x38   :  { %2255 = shalt.err (!%p2252_p4)
}
  0x39   :  { %s2256_s5 = scalar_lea.vmem %s111_s20, 4096  ;;  %p2261_p6 = scmp.lt.s32.totalorder %s111_s20, %s111_s20 }
  0x3a   :  { %p2257_p5 = scmp.ne.s32.totalorder %s111_s20, %s2256_s5  ;;  %p2262_p7 = scmp.lt.s32.totalorder %s2256_s5, %s2256_s5 }
  0x3c   :  { %p2263_p8 = por %p2262_p7, %p2261_p6 }
  0x3e   :  { %p2264_p9 = pnand %p2263_p8, %p2257_p5 }
  0x40   :  { %2267 = shalt.err (!%p2264_p9)
}
  0x41   :  { %116 = dma.hbm_to_vmem [thread:$0]  %s2758_s13, 4096, %s111_s20, [#allocation12], %s2390_s28, %s2390_s28, %s2391_s29  }
  0x42   :  { %s2776_s19 = sld [smem:[#allocation22_spill]] }
  0x48   :  { %s2268_s1 = scalar_lea.hbm %s2776_s19, 8192 }
  0x49   :  { %p2269_p10 = scmp.ne.s32.totalorder %s2776_s19, %s2268_s1  ;;  %p2272_p11 = scmp.lt.u32.totalorder %s2268_s1, %s2776_s19 }
  0x4b   :  { %p2274_p12 = pnand %p2272_p11, %p2269_p10 }
  0x4d   :  { %2277 = shalt.err (!%p2274_p12)
}
  0x4e   :  { %s2278_s26 = scalar_lea.vmem %s2542_s22, 8192  ;;  %p2283_p0 = scmp.lt.s32.totalorder %s2542_s22, %s2542_s22 }
  0x4f   :  { %p2279_p13 = scmp.ne.s32.totalorder %s2542_s22, %s2278_s26  ;;  %p2284_p1 = scmp.lt.s32.totalorder %s2278_s26, %s2278_s26 }
  0x51   :  { %p2285_p2 = por %p2284_p1, %p2283_p0 }
  0x53   :  { %p2286_p3 = pnand %p2285_p2, %p2279_p13 }
  0x55   :  { %2289 = shalt.err (!%p2286_p3)
}
  0x56   :  { %44 = dma.hbm_to_vmem [thread:$0]  %s2776_s19, 8192, %s2542_s22, [#allocation3], %s2390_s28, %s2390_s28, %s2391_s29  }
  0x57   :  { %s2394_s27 = smov [#allocation7]   ;;  %s2290_s2 = scalar_lea.hbm %s2749_s4, 6144 }
  0x58   :  { %s62_s5 = sshll.u32 %s2394_s27, 4  ;;  %p2291_p4 = scmp.ne.s32.totalorder %s2749_s4, %s2290_s2  ;;  %s63_s5 = int_to_ptr.vmem [resolvable:$true] %s62_s5 }
  0x59   :  { %p2294_p5 = scmp.lt.u32.totalorder %s2290_s2, %s2749_s4 }
  0x5b   :  { %p2296_p6 = pnand %p2294_p5, %p2291_p4 }
  0x5d   :  { %2299 = shalt.err (!%p2296_p6)
}
  0x5e   :  { %s2300_s25 = scalar_lea.vmem %s63_s5, 6144  ;;  %p2305_p8 = scmp.lt.s32.totalorder %s63_s5, %s63_s5 }
  0x5f   :  { %p2301_p7 = scmp.ne.s32.totalorder %s63_s5, %s2300_s25  ;;  %p2306_p9 = scmp.lt.s32.totalorder %s2300_s25, %s2300_s25 }
  0x61   :  { %p2307_p10 = por %p2306_p9, %p2305_p8 }
  0x63   :  { %p2308_p11 = pnand %p2307_p10, %p2301_p7 }
  0x65   :  { %2311 = shalt.err (!%p2308_p11)
}
  0x66   :  { %s2395_s28 = smov 384   ;;  %s2396_s29 = smov 24  }
  0x67   :  { %68 = dma.hbm_to_vmem [thread:$0]  %s2749_s4, 6144, %s63_s5, [#allocation6], %s2395_s28, %s2395_s28, %s2396_s29  }
  0x68   :  { %s2397_s3 = smov [#allocation10]   ;;  %s2312_s27 = scalar_lea.hbm %s2756_s11, 4096 }
  0x69   :  { %s96_s26 = sshll.u32 %s2397_s3, 4  ;;  %p2313_p12 = scmp.ne.s32.totalorder %s2756_s11, %s2312_s27  ;;  %s97_s26 = int_to_ptr.vmem [resolvable:$true] %s96_s26 }
  0x6a   :  { %p2316_p13 = scmp.lt.u32.totalorder %s2312_s27, %s2756_s11 }
  0x6c   :  { %p2318_p0 = pnand %p2316_p13, %p2313_p12 }
  0x6e   :  { %2321 = shalt.err (!%p2318_p0)
}
  0x6f   :  { %s2322_s1 = scalar_lea.vmem %s97_s26, 4096  ;;  %p2327_p2 = scmp.lt.s32.totalorder %s97_s26, %s97_s26 }
  0x70   :  { %p2323_p1 = scmp.ne.s32.totalorder %s97_s26, %s2322_s1  ;;  %p2328_p3 = scmp.lt.s32.totalorder %s2322_s1, %s2322_s1 }
  0x72   :  { %p2329_p4 = por %p2328_p3, %p2327_p2 }
  0x74   :  { %p2330_p5 = pnand %p2329_p4, %p2323_p1 }
  0x76   :  { %2333 = shalt.err (!%p2330_p5)
}
  0x77   :  { %s2398_s4 = smov 256   ;;  %s2399_s5 = smov 16  }
  0x78   :  { %102 = dma.hbm_to_vmem [thread:$0]  %s2756_s11, 4096, %s97_s26, [#allocation9], %s2398_s4, %s2398_s4, %s2399_s5  }
  0x79   :  { %s2400_s25 = smov [#allocation13]   ;;  %s2334_s13 = scalar_lea.hbm %s2762_s17, 6144 }
  0x7a   :  { %s128_s22 = sshll.u32 %s2400_s25, 4  ;;  %p2335_p6 = scmp.ne.s32.totalorder %s2762_s17, %s2334_s13  ;;  %s129_s22 = int_to_ptr.vmem [resolvable:$true] %s128_s22 }
  0x7b   :  { %p2338_p7 = scmp.lt.u32.totalorder %s2334_s13, %s2762_s17 }
  0x7d   :  { %p2340_p8 = pnand %p2338_p7, %p2335_p6 }
  0x7f   :  { %2343 = shalt.err (!%p2340_p8)
}
  0x80   :  { %s2344_s2 = scalar_lea.vmem %s129_s22, 6144  ;;  %p2349_p10 = scmp.lt.s32.totalorder %s129_s22, %s129_s22 }
  0x81   :  { %p2345_p9 = scmp.ne.s32.totalorder %s129_s22, %s2344_s2  ;;  %p2350_p11 = scmp.lt.s32.totalorder %s2344_s2, %s2344_s2 }
  0x83   :  { %p2351_p12 = por %p2350_p11, %p2349_p10 }
  0x85   :  { %p2352_p13 = pnand %p2351_p12, %p2345_p9 }
  0x87   :  { %2355 = shalt.err (!%p2352_p13)
}
  0x88   :  { %134 = dma.hbm_to_vmem [thread:$0]  %s2762_s17, 6144, %s129_s22, [#allocation12], %s2395_s28, %s2395_s28, %s2396_s29  }
  0x89   :  { %2378 = dma.done.wait [#allocation3], 8192  }
  0x8a   :  { %2379 = vsyncadd [#allocation3], 4294959104 }
  0x8b   :  { %2380 = dma.done.wait [#allocation6], 8192  }
  0x8c   :  { %2381 = vsyncadd [#allocation6], 4294959104 }
  0x8d   :  { %2382 = dma.done.wait [#allocation9], 6144  }
  0x8e   :  { %2383 = vsyncadd [#allocation9], 4294961152 }
  0x8f   :  { %2384 = dma.done.wait [#allocation12], 10240  }
  0x90   :  { %2385 = vsyncadd [#allocation12], 4294957056  ;;  %v2401_v0 = vmov 0   ;;  %s2777_s4 = sld [smem:[#allocation20_spill]]  ;;  %v211_v3 = vld [vmem:[#allocation2 + $0x80] sm:$0xff]  ;;  %v212_v4 = vld [vmem:[#allocation2 + $0x88] sm:$0xff] }
  0x91   :  { %2173 = vset.pattern.permute.xlu0 %v2401_v0  ;;  %v243_v5 = vld [vmem:[#allocation2 + $0x180] sm:$0xff]  ;;  %v244_v6 = vld [vmem:[#allocation2 + $0x188] sm:$0xff]  ;;  %v1860_v7 = vpack.c.bf16 %v212_v4, %v211_v3  ;;  %v213_v14 = vld [vmem:[#allocation2 + $0x90] sm:$0xff]  ;;  %s2778_s19 = sld [smem:[#allocation21_spill]]  ;;  %vm731_vm8 = vcmask 130048  }
  0x92   :  { %v1892_v8 = vpack.c.bf16 %v244_v6, %v243_v5  ;;  %v195_v9 = vld [vmem:[#allocation2] sm:$0xff]  ;;  %v196_v10 = vld [vmem:[#allocation2 + $0x8] sm:$0xff]  ;;  %v214_v15 = vld [vmem:[#allocation2 + $0x98] sm:$0xff] }
  0x93   :  { %v227_v11 = vld [vmem:[#allocation2 + $0x100] sm:$0xff]  ;;  %v1862_v12 = vpack.c.bf16 %v196_v10, %v195_v9  ;;  %v228_v13 = vld [vmem:[#allocation2 + $0x108] sm:$0xff]  ;;  %1861 = vmatprep.subr.bf16.mxu0 %v1860_v7  ;;  %v1864_v17 = vpack.c.bf16 %v214_v15, %v213_v14  ;;  %v245_v18 = vld [vmem:[#allocation2 + $0x190] sm:$0xff] }
  0x94   :  { %1893 = vmatprep.subr.bf16.mxu1 %v1892_v8  ;;  %v1894_v16 = vpack.c.bf16 %v228_v13, %v227_v11  ;;  %v246_v19 = vld [vmem:[#allocation2 + $0x198] sm:$0xff]  ;;  %v197_v20 = vld [vmem:[#allocation2 + $0x10] sm:$0xff]  ;;  %v215_v27 = vld [vmem:[#allocation2 + $0xa0] sm:$0xff] }
  0x95   :  { %1863 = vmatpush3.bf16.msra.mxu0 %v1862_v12  ;;  %v1896_v21 = vpack.c.bf16 %v246_v19, %v245_v18  ;;  %v198_v22 = vld [vmem:[#allocation2 + $0x18] sm:$0xff]  ;;  %v229_v23 = vld [vmem:[#allocation2 + $0x110] sm:$0xff]  ;;  %v216_v28 = vld [vmem:[#allocation2 + $0xa8] sm:$0xff] }
  0x96   :  { %v158_v1 = vld [vmem:[%s2777_s4] sm:$0xff]  ;;  %v159_v2 = vld [vmem:[%s2777_s4 + $0x8] sm:$0xff]  ;;  %1895 = vmatpush3.bf16.msra.mxu1 %v1894_v16  ;;  %1865 = vmatprep.subr.bf16.mxu0 %v1864_v17  ;;  %v1866_v25 = vpack.c.bf16 %v198_v22, %v197_v20  ;;  %v247_v29 = vld [vmem:[#allocation2 + $0x1a0] sm:$0xff]  ;;  %v1868_v30 = vpack.c.bf16 %v216_v28, %v215_v27 }
  0x97   :  { %166 = vperm.xlu0 %2173, %v158_v1   ;;  %v230_v24 = vld [vmem:[#allocation2 + $0x118] sm:$0xff]  ;;  %1897 = vmatprep.subr.bf16.mxu1 %v1896_v21  ;;  %v248_v31 = vld [vmem:[#allocation2 + $0x1a8] sm:$0xff]  ;;  %v199_v32 = vld [vmem:[#allocation2 + $0x20] sm:$0xff] }
  0x98   :  { %v1898_v26 = vpack.c.bf16 %v230_v24, %v229_v23  ;;  %v200_v33 = vld [vmem:[#allocation2 + $0x28] sm:$0xff]  ;;  %v1900_v34 = vpack.c.bf16 %v248_v31, %v247_v29  ;;  %v231_v35 = vld [vmem:[#allocation2 + $0x120] sm:$0xff]  ;;  %v217_v37 = vld [vmem:[#allocation2 + $0xb0] sm:$0xff] }
  0x99   :  { %v232_v36 = vld [vmem:[#allocation2 + $0x128] sm:$0xff]  ;;  %1867 = vmatpush3.bf16.msra.mxu0 %v1866_v25  ;;  %v1870_v38 = vpack.c.bf16 %v200_v33, %v199_v32  ;;  %v218_v39 = vld [vmem:[#allocation2 + $0xb8] sm:$0xff]  ;;  %v249_v40 = vld [vmem:[#allocation2 + $0x1b0] sm:$0xff] }
  0x9a   :  { %v250_v41 = vld [vmem:[#allocation2 + $0x1b8] sm:$0xff]  ;;  %1899 = vmatpush3.bf16.msra.mxu1 %v1898_v26  ;;  %1869 = vmatprep.subr.bf16.mxu0 %v1868_v30  ;;  %v1902_v42 = vpack.c.bf16 %v232_v36, %v231_v35  ;;  %v1872_v43 = vpack.c.bf16 %v218_v39, %v217_v37  ;;  %v201_v44 = vld [vmem:[#allocation2 + $0x30] sm:$0xff]  ;;  %v219_v49 = vld [vmem:[#allocation2 + $0xc0] sm:$0xff]  ;;  %v160_v35 = vlaneseq }
  0x9b   :  { %169 = vperm.xlu0 %2173, %v159_v2   ;;  %v202_v45 = vld [vmem:[#allocation2 + $0x38] sm:$0xff]  ;;  %v233_v46 = vld [vmem:[#allocation2 + $0x130] sm:$0xff]  ;;  %1901 = vmatprep.subr.bf16.mxu1 %v1900_v34  ;;  %v1904_v47 = vpack.c.bf16 %v250_v41, %v249_v40  ;;  %v220_v50 = vld [vmem:[#allocation2 + $0xc8] sm:$0xff]  ;;  %v2402_v41 = vmov 1.0  }
  0x9c   :  { %v234_v48 = vld [vmem:[#allocation2 + $0x138] sm:$0xff]  ;;  %v251_v51 = vld [vmem:[#allocation2 + $0x1c0] sm:$0xff]  ;;  %v252_v52 = vld [vmem:[#allocation2 + $0x1c8] sm:$0xff]  ;;  %v1874_v53 = vpack.c.bf16 %v202_v45, %v201_v44  ;;  %v1876_v55 = vpack.c.bf16 %v220_v50, %v219_v49  ;;  %v161_v36 = vand.u32 127, %v160_v35 }
  0x9d   :  { %1871 = vmatpush3.bf16.msra.mxu0 %v1870_v38  ;;  %v1906_v54 = vpack.c.bf16 %v234_v48, %v233_v46  ;;  %v203_v56 = vld [vmem:[#allocation2 + $0x40] sm:$0xff]  ;;  %v204_v57 = vld [vmem:[#allocation2 + $0x48] sm:$0xff]  ;;  %v1908_v59 = vpack.c.bf16 %v252_v52, %v251_v51  ;;  %v221_v61 = vld [vmem:[#allocation2 + $0xd0] sm:$0xff] }
  0x9e   :  { %1903 = vmatpush3.bf16.msra.mxu1 %v1902_v42  ;;  %1873 = vmatprep.subr.bf16.mxu0 %v1872_v43  ;;  %v235_v58 = vld [vmem:[#allocation2 + $0x140] sm:$0xff]  ;;  %v236_v60 = vld [vmem:[#allocation2 + $0x148] sm:$0xff]  ;;  %v222_v62 = vld [vmem:[#allocation2 + $0xd8] sm:$0xff]  ;;  %v1878_v1 = vpack.c.bf16 %v204_v57, %v203_v56  ;;  %v162_v37 = vadd.s32 128, %v161_v36  ;;  %v164_v38 = vadd.s32 384, %v161_v36  ;;  %v163_v39 = vadd.s32 256, %v161_v36 }
  0x9f   :  { %1905 = vmatprep.subr.bf16.mxu1 %v1904_v47  ;;  %v253_v63 = vld [vmem:[#allocation2 + $0x1d0] sm:$0xff]  ;;  %v254_v0 = vld [vmem:[#allocation2 + $0x1d8] sm:$0xff]  ;;  %v1910_v2 = vpack.c.bf16 %v236_v60, %v235_v58  ;;  %v1880_v3 = vpack.c.bf16 %v222_v62, %v221_v61  ;;  %v223_v9 = vld [vmem:[#allocation2 + $0xe0] sm:$0xff] }
  0xa0   :  { %v205_v4 = vld [vmem:[#allocation2 + $0x50] sm:$0xff]  ;;  %v206_v5 = vld [vmem:[#allocation2 + $0x58] sm:$0xff]  ;;  %v1912_v7 = vpack.c.bf16 %v254_v0, %v253_v63  ;;  %v224_v10 = vld [vmem:[#allocation2 + $0xe8] sm:$0xff] }
  0xa1   :  { %1875 = vmatpush3.bf16.msra.mxu0 %v1874_v53  ;;  %v237_v6 = vld [vmem:[#allocation2 + $0x150] sm:$0xff]  ;;  %v238_v8 = vld [vmem:[#allocation2 + $0x158] sm:$0xff]  ;;  %v255_v11 = vld [vmem:[#allocation2 + $0x1e0] sm:$0xff]  ;;  %v1882_v13 = vpack.c.bf16 %v206_v5, %v205_v4  ;;  %v1884_v15 = vpack.c.bf16 %v224_v10, %v223_v9 }
  0xa2   :  { %1907 = vmatpush3.bf16.msra.mxu1 %v1906_v54  ;;  %1877 = vmatprep.subr.bf16.mxu0 %v1876_v55  ;;  %v256_v12 = vld [vmem:[#allocation2 + $0x1e8] sm:$0xff]  ;;  %v1914_v14 = vpack.c.bf16 %v238_v8, %v237_v6  ;;  %v207_v16 = vld [vmem:[#allocation2 + $0x60] sm:$0xff]  ;;  %v225_v21 = vld [vmem:[#allocation2 + $0xf0] sm:$0xff] }
  0xa3   :  { %1909 = vmatprep.subr.bf16.mxu1 %v1908_v59  ;;  %v208_v17 = vld [vmem:[#allocation2 + $0x68] sm:$0xff]  ;;  %v239_v18 = vld [vmem:[#allocation2 + $0x160] sm:$0xff]  ;;  %v1916_v19 = vpack.c.bf16 %v256_v12, %v255_v11  ;;  %v226_v22 = vld [vmem:[#allocation2 + $0xf8] sm:$0xff] }
  0xa4   :  { %v240_v20 = vld [vmem:[#allocation2 + $0x168] sm:$0xff]  ;;  %v257_v23 = vld [vmem:[#allocation2 + $0x1f0] sm:$0xff]  ;;  %v258_v24 = vld [vmem:[#allocation2 + $0x1f8] sm:$0xff]  ;;  %v1886_v25 = vpack.c.bf16 %v208_v17, %v207_v16  ;;  %v1888_v27 = vpack.c.bf16 %v226_v22, %v225_v21 }
  0xa5   :  { %1879 = vmatpush3.bf16.msra.mxu0 %v1878_v1  ;;  %v1918_v26 = vpack.c.bf16 %v240_v20, %v239_v18  ;;  %v209_v28 = vld [vmem:[#allocation2 + $0x70] sm:$0xff]  ;;  %v210_v29 = vld [vmem:[#allocation2 + $0x78] sm:$0xff]  ;;  %v1920_v30 = vpack.c.bf16 %v258_v24, %v257_v23  ;;  %v455_v43 = vld [vmem:[#allocation7 + $0x8] sm:$0xff] }
  0xa6   :  { %1911 = vmatpush3.bf16.msra.mxu1 %v1910_v2  ;;  %1881 = vmatprep.subr.bf16.mxu0 %v1880_v3  ;;  %v241_v31 = vld [vmem:[#allocation2 + $0x170] sm:$0xff]  ;;  %v242_v32 = vld [vmem:[#allocation2 + $0x178] sm:$0xff]  ;;  %v1890_v33 = vpack.c.bf16 %v210_v29, %v209_v28  ;;  %v458_v44 = vld [vmem:[#allocation7 + $0x20] sm:$0xff] }
  0xa7   :  { %1913 = vmatprep.subr.bf16.mxu1 %v1912_v7  ;;  %v1922_v34 = vpack.c.bf16 %v242_v32, %v241_v31  ;;  %v454_v45 = vld [vmem:[#allocation7] sm:$0xff]  ;;  %v1924_v46 = vpack.c.bf16 %v458_v44, %v455_v43  ;;  %v457_v47 = vld [vmem:[#allocation7 + $0x18] sm:$0xff]  ;;  %v464_v49 = vld [vmem:[#allocation7 + $0x50] sm:$0xff] }
  0xa8   :  { %v461_v48 = vld [vmem:[#allocation7 + $0x38] sm:$0xff]  ;;  %v1926_v50 = vpack.c.bf16 %v457_v47, %v454_v45  ;;  %v456_v52 = vld [vmem:[#allocation7 + $0x10] sm:$0xff]  ;;  %v459_v53 = vld [vmem:[#allocation7 + $0x28] sm:$0xff] }
  0xa9   :  { %1883 = vmatpush3.bf16.msra.mxu0 %v1882_v13  ;;  %v1928_v51 = vpack.c.bf16 %v464_v49, %v461_v48  ;;  %v1956_v54 = vpack.c.bf16 %v459_v53, %v456_v52  ;;  %v259_v57 = vld [vmem:[#allocation5] sm:$0xff]  ;;  %v460_v10 = vld [vmem:[#allocation7 + $0x30] sm:$0xff]  ;;  %v463_v11 = vld [vmem:[#allocation7 + $0x48] sm:$0xff] }
  0xaa   :  { %1915 = vmatpush3.bf16.msra.mxu1 %v1914_v14  ;;  %1885 = vmatprep.subr.bf16.mxu0 %v1884_v15  ;;  %v1930_v12 = vpack.c.bf16 %v463_v11, %v460_v10  ;;  %v467_v13 = vld [vmem:[#allocation7 + $0x68] sm:$0xff]  ;;  %v470_v14 = vld [vmem:[#allocation7 + $0x80] sm:$0xff]  ;;  %v465_v17 = vld [vmem:[#allocation7 + $0x58] sm:$0xff] }
  0xab   :  { %1917 = vmatprep.subr.bf16.mxu1 %v1916_v19  ;;  %v462_v15 = vld [vmem:[#allocation7 + $0x40] sm:$0xff]  ;;  %v1932_v16 = vpack.c.bf16 %v470_v14, %v467_v13  ;;  %v469_v19 = vld [vmem:[#allocation7 + $0x78] sm:$0xff]  ;;  %v476_v23 = vld [vmem:[#allocation7 + $0xb0] sm:$0xff] }
  0xac   :  { %v466_v18 = vld [vmem:[#allocation7 + $0x60] sm:$0xff]  ;;  %v1960_v20 = vpack.c.bf16 %v465_v17, %v462_v15  ;;  %v473_v22 = vld [vmem:[#allocation7 + $0x98] sm:$0xff]  ;;  %v468_v24 = vld [vmem:[#allocation7 + $0x70] sm:$0xff] }
  0xad   :  { %1887 = vmatpush3.bf16.msra.mxu0 %v1886_v25  ;;  %v1934_v21 = vpack.c.bf16 %v469_v19, %v466_v18  ;;  %v1936_v25 = vpack.c.bf16 %v476_v23, %v473_v22  ;;  %v475_v28 = vld [vmem:[#allocation7 + $0xa8] sm:$0xff]  ;;  %v482_v32 = vld [vmem:[#allocation7 + $0xe0] sm:$0xff]  ;;  %v480_v43 = vld [vmem:[#allocation7 + $0xd0] sm:$0xff] }
  0xae   :  { %1919 = vmatpush3.bf16.msra.mxu1 %v1918_v26  ;;  %1889 = vmatprep.subr.bf16.mxu0 %v1888_v27  ;;  %v471_v26 = vld [vmem:[#allocation7 + $0x88] sm:$0xff]  ;;  %v472_v27 = vld [vmem:[#allocation7 + $0x90] sm:$0xff]  ;;  %v486_v52 = vld [vmem:[#allocation7 + $0x100] sm:$0xff] }
  0xaf   :  { %1921 = vmatprep.subr.bf16.mxu1 %v1920_v30  ;;  %v1964_v29 = vpack.c.bf16 %v471_v26, %v468_v24  ;;  %v1938_v30 = vpack.c.bf16 %v475_v28, %v472_v27  ;;  %v479_v31 = vld [vmem:[#allocation7 + $0xc8] sm:$0xff]  ;;  %v1555_v26 = vld [vmem:[%s2752_s7] ss:$0 sm:$0xff] }
  0xb0   :  { %v483_v45 = vld [vmem:[#allocation7 + $0xe8] sm:$0xff]  ;;  %v1556_v28 = vld [vmem:[%s2753_s8] ss:$0 sm:$0xff] }
  0xb1   :  { %1891 = vmatpush3.bf16.msra.mxu0 %v1890_v33  ;;  %v474_v33 = vld [vmem:[#allocation7 + $0xa0] sm:$0xff]  ;;  %v487_v47 = vld [vmem:[#allocation7 + $0x108] sm:$0xff]  ;;  %v1972_v48 = vpack.c.bf16 %v483_v45, %v480_v43  ;;  %v654_v45 = vld [vmem:[%s2778_s19] sm:$0xff] }
  0xb2   :  { %1923 = vmatpush3.bf16.msra.mxu1 %v1922_v34  ;;  %1925 = vmatprep.subr.bf16.mxu0 %v1924_v46  ;;  %v1940_v34 = vpack.c.bf16 %v482_v32, %v479_v31  ;;  %v484_v46 = vld [vmem:[#allocation7 + $0xf0] sm:$0xff] }
  0xb3   :  { %1957 = vmatprep.subr.bf16.mxu1 %v1956_v54  ;;  %v1946_v49 = vpack.c.bf16 %v487_v47, %v484_v46  ;;  %v655_v47 = vld [vmem:[%s2778_s19 + $0x8] sm:$0xff] }
 0x116   :  { %v167_v40 = vpop.permute.xlu0 %166 }
 0x117   :  { %vm172_vm0 = vcmp.eq.s32.totalorder %v162_v37, %v167_v40  ;;  %vm174_vm1 = vcmp.eq.s32.totalorder %v164_v38, %v167_v40  ;;  %vm171_vm2 = vcmp.eq.s32.totalorder %v161_v36, %v167_v40  ;;  %vm173_vm3 = vcmp.eq.s32.totalorder %v163_v39, %v167_v40 }
 0x118   :  { %1547 = vmatprep.mubr.msk.f32.mxu0 %vm172_vm0, %v2402_v41  ;;  %1551 = vmatprep.mubr.msk.f32.mxu1 %vm174_vm1, %v2402_v41 }
 0x119   :  { %1548 = vmatmul.mubr.msk.f32.vlgmr.msra.gmra.mrb[0].mxu0 %vm171_vm2, %v2402_v41  ;;  %1552 = vmatmul.mubr.msk.f32.vlgmr.msra.gmra.mrb[0].mxu1 %vm173_vm3, %v2402_v41 }
 0x11a   :  { %v170_v42 = vpop.permute.xlu0 %169  ;;  %1927 = vmatpush1.bf16.msra.mxu0 %v1926_v50  ;;  %1959 = vmatpush3.bf16.msra.mxu1 %v1956_v54  ;;  %v491_v50 = vld [vmem:[#allocation7 + $0x128] sm:$0xff]  ;;  %v489_v54 = vld [vmem:[#allocation7 + $0x118] sm:$0xff] }
 0x11b   :  { %vm176_vm4 = vcmp.eq.s32.totalorder %v162_v37, %v170_v42  ;;  %vm178_vm5 = vcmp.eq.s32.totalorder %v164_v38, %v170_v42  ;;  %vm175_vm6 = vcmp.eq.s32.totalorder %v161_v36, %v170_v42  ;;  %vm177_vm7 = vcmp.eq.s32.totalorder %v163_v39, %v170_v42  ;;  %1929 = vmatprep.subr.bf16.mxu0 %v1928_v51  ;;  %v477_v36 = vld [vmem:[#allocation7 + $0xb8] sm:$0xff]  ;;  %v478_v37 = vld [vmem:[#allocation7 + $0xc0] sm:$0xff]  ;;  %v488_v42 = vld [vmem:[#allocation7 + $0x110] sm:$0xff] }
 0x11c   :  { %1549 = vmatprep.mubr.msk.f32.mxu0 %vm176_vm4, %v2402_v41  ;;  %1553 = vmatprep.mubr.msk.f32.mxu1 %vm178_vm5, %v2402_v41  ;;  %v481_v38 = vld [vmem:[#allocation7 + $0xd8] sm:$0xff]  ;;  %v1968_v39 = vpack.c.bf16 %v477_v36, %v474_v33  ;;  %v494_v51 = vld [vmem:[#allocation7 + $0x140] sm:$0xff] }
 0x11d   :  { %1550 = vmatmul.mubr.msk.f32.gmra.mrb[2].mxu0 %vm175_vm6, %v2402_v41  ;;  %1554 = vmatmul.mubr.msk.f32.gmra.mrb[2].mxu1 %vm177_vm7, %v2402_v41  ;;  %v1942_v40 = vpack.c.bf16 %v481_v38, %v478_v37  ;;  %v485_v41 = vld [vmem:[#allocation7 + $0xf8] sm:$0xff]  ;;  %v1948_v53 = vpack.c.bf16 %v494_v51, %v491_v50 }
 0x11e   :  { %1931 = vmatpush1.bf16.msra.mxu0 %v1930_v12  ;;  %1961 = vmatprep.subr.bf16.mxu1 %v1960_v20  ;;  %v1944_v44 = vpack.c.bf16 %v488_v42, %v485_v41 }
 0x11f   :  { %1933 = vmatprep.subr.bf16.mxu0 %v1932_v16  ;;  %1963 = vmatpush3.bf16.msra.mxu1 %v1960_v20 }
 0x120   :  { %1965 = vmatprep.subr.bf16.mxu1 %v1964_v29 }
 0x122   :  { %1935 = vmatpush1.bf16.msra.mxu0 %v1934_v21 }
 0x123   :  { %1937 = vmatprep.subr.bf16.mxu0 %v1936_v25  ;;  %1967 = vmatpush3.bf16.msra.mxu1 %v1964_v29 }
 0x124   :  { %1969 = vmatprep.subr.bf16.mxu1 %v1968_v39 }
 0x126   :  { %1939 = vmatpush1.bf16.msra.mxu0 %v1938_v30 }
 0x127   :  { %1941 = vmatprep.subr.bf16.mxu0 %v1940_v34  ;;  %1971 = vmatpush3.bf16.msra.mxu1 %v1968_v39 }
 0x128   :  { %1973 = vmatprep.subr.bf16.mxu1 %v1972_v48 }
 0x12a   :  { %1943 = vmatpush1.bf16.msra.mxu0 %v1942_v40 }
 0x12b   :  { %1945 = vmatprep.subr.bf16.mxu0 %v1944_v44  ;;  %1975 = vmatpush3.bf16.msra.mxu1 %v1972_v48 }
 0x12e   :  { %1947 = vmatpush1.bf16.msra.mxu0 %v1946_v49 }
 0x12f   :  { %1949 = vmatprep.subr.bf16.mxu0 %v1948_v53 }
 0x1ec   :  { %v1597_v55 = vpop.f32.mrb[0].mxu0  ;;  %v1635_v56 = vpop.f32.mrb[0].mxu1 }
 0x1ed   :  { %v1598_v58 = vpop.f32.mrb[1].mxu0  ;;  %v1636_v59 = vpop.f32.mrb[1].mxu1 }
 0x1ee   :  { %v1599_v60 = vadd.f32 %v1598_v58, %v1597_v55  ;;  %v1637_v61 = vadd.f32 %v1636_v59, %v1635_v56  ;;  %v490_v55 = vld [vmem:[#allocation7 + $0x120] sm:$0xff]  ;;  %v493_v56 = vld [vmem:[#allocation7 + $0x138] sm:$0xff] }
 0x1ef   :  { %v1950_v58 = vpack.c.bf16 %v493_v56, %v490_v55  ;;  %v497_v59 = vld [vmem:[#allocation7 + $0x158] sm:$0xff] }
 0x1f0   :  { %v327_v62 = vadd.f32 %v1599_v60, %v259_v57  ;;  %v1600_v63 = vpop.f32.mrb[2].mxu0  ;;  %v1638_v0 = vpop.f32.mrb[2].mxu1  ;;  %v500_v60 = vld [vmem:[#allocation7 + $0x170] sm:$0xff] }
 0x1f1   :  { %v1601_v1 = vpop.f32.mrb[3].mxu0  ;;  %v1639_v2 = vpop.f32.mrb[3].mxu1  ;;  %1951 = vmatpush1.bf16.msra.mxu0 %v1950_v58 }
 0x1f2   :  { %v2628_v3 = vadd.f32 %v1637_v61, %v327_v62  ;;  %v1602_v4 = vadd.f32 %v1601_v1, %v1600_v63  ;;  %v1640_v5 = vadd.f32 %v1639_v2, %v1638_v0  ;;  %v492_v61 = vld [vmem:[#allocation7 + $0x130] sm:$0xff]  ;;  %v1952_v62 = vpack.c.bf16 %v500_v60, %v497_v59  ;;  %v495_v63 = vld [vmem:[#allocation7 + $0x148] sm:$0xff] }
 0x1f3   :  { %v496_v0 = vld [vmem:[#allocation7 + $0x150] sm:$0xff]  ;;  %v499_v1 = vld [vmem:[#allocation7 + $0x168] sm:$0xff]  ;;  %v1980_v2 = vpack.c.bf16 %v495_v63, %v492_v61  ;;  %v835_v63 = vld [vmem:[#allocation8] sm:$0xff] }
 0x1f4   :  { %v332_v6 = vadd.f32 %v1602_v4, %v259_v57  ;;  %412 = vadd.xlane.f32.xlu1 %v2628_v3  ;;  %v418_v8 = vmul.f32 %v2628_v3, %v2628_v3  ;;  %v1976_v57 = vpack.c.bf16 %v489_v54, %v486_v52  ;;  %v1954_v4 = vpack.c.bf16 %v499_v1, %v496_v0  ;;  %v836_v0 = vld [vmem:[#allocation8 + $0x8] sm:$0xff]  ;;  %v837_v1 = vld [vmem:[#allocation8 + $0x10] sm:$0xff] }
 0x1f5   :  { %1953 = vmatprep.subr.bf16.mxu0 %v1952_v62 }
 0x1f6   :  { %v2631_v7 = vadd.f32 %v1640_v5, %v332_v6  ;;  %1977 = vmatprep.subr.bf16.mxu1 %v1976_v57  ;;  %v2403_v5 = vmov 0.0   ;;  %1955 = vmatpush1.bf16.msra.mxu0 %v1954_v4  ;;  %v498_v6 = vld [vmem:[#allocation7 + $0x160] sm:$0xff]  ;;  %v838_v4 = vld [vmem:[#allocation8 + $0x18] sm:$0xff] }
 0x1f7   :  { %1979 = vmatpush3.bf16.msra.mxu1 %v1976_v57  ;;  %566 = vmatprep.mubr.f32.mxu0 %v2403_v5 }
 0x1f8   :  { %420 = vadd.xlane.f32.xlu1 %v418_v8  ;;  %414 = vadd.xlane.f32.xlu0 %v2631_v7  ;;  %v419_v9 = vmul.f32 %v2631_v7, %v2631_v7  ;;  %v501_v8 = vld [vmem:[#allocation7 + $0x178] sm:$0xff] }
 0x1f9   :  { %1981 = vmatprep.subr.bf16.mxu1 %v1980_v2 }
 0x1fb   :  { %1983 = vmatpush3.bf16.msra.mxu1 %v1980_v2  ;;  %v1996_v2 = vpack.c.bf16 %v836_v0, %v835_v63  ;;  %v991_v63 = vld [vmem:[#allocation10 + $0x60] sm:$0xff]  ;;  %v993_v0 = vld [vmem:[#allocation10 + $0x70] sm:$0xff] }
 0x1fc   :  { %422 = vadd.xlane.f32.xlu1 %v419_v9  ;;  %v1984_v9 = vpack.c.bf16 %v501_v8, %v498_v6  ;;  %v2000_v6 = vpack.c.bf16 %v838_v4, %v837_v1  ;;  %v839_v8 = vld [vmem:[#allocation8 + $0x20] sm:$0xff]  ;;  %v2042_v1 = vpack.c.bf16 %v993_v0, %v991_v63  ;;  %v998_v4 = vld [vmem:[#allocation10 + $0x98] sm:$0xff] }
 0x1fd   :  { %v1155_v63 = vld [vmem:[#allocation11 + $0x98] sm:$0xff] }
 0x1fe   :  { %1985 = vmatprep.subr.bf16.mxu1 %v1984_v9 }
 0x1ff   :  { %1987 = vmatpush3.bf16.msra.mxu1 %v1984_v9  ;;  %v840_v9 = vld [vmem:[#allocation8 + $0x28] sm:$0xff] }
 0x200   :  { %1997 = vmatprep.subr.bf16.mxu1 %v1996_v2 }
 0x281   :  { %v413_v10 = vpop.xlane.xlu1 %412 }
 0x282   :  { %v416_v11 = vmul.f32 0.023809524, %v413_v10  ;;  %v2004_v10 = vpack.c.bf16 %v840_v9, %v839_v8  ;;  %v995_v8 = vld [vmem:[#allocation10 + $0x80] sm:$0xff]  ;;  %v997_v9 = vld [vmem:[#allocation10 + $0x90] sm:$0xff] }
 0x284   :  { %v426_v14 = vmul.f32 %v416_v11, %v416_v11  ;;  %v430_v24 = vsub.f32 %v2628_v3, %v416_v11  ;;  %v841_v11 = vld [vmem:[#allocation8 + $0x30] sm:$0xff] }
 0x285   :  { %v421_v12 = vpop.xlane.xlu1 %420  ;;  %v415_v13 = vpop.xlane.xlu0 %414 }
 0x286   :  { %v424_v15 = vmul.f32 0.023809524, %v421_v12  ;;  %v417_v16 = vmul.f32 0.023809524, %v415_v13  ;;  %v842_v12 = vld [vmem:[#allocation8 + $0x38] sm:$0xff] }
 0x287   :  { %v2008_v13 = vpack.c.bf16 %v842_v12, %v841_v11  ;;  %v1000_v11 = vld [vmem:[#allocation10 + $0xa8] sm:$0xff]  ;;  %v1002_v12 = vld [vmem:[#allocation10 + $0xb8] sm:$0xff] }
 0x288   :  { %v428_v17 = vsub.f32 %v424_v15, %v426_v14  ;;  %v427_v20 = vmul.f32 %v417_v16, %v417_v16  ;;  %v431_v29 = vsub.f32 %v2631_v7, %v417_v16  ;;  %v843_v14 = vld [vmem:[#allocation8 + $0x40] sm:$0xff]  ;;  %v844_v15 = vld [vmem:[#allocation8 + $0x48] sm:$0xff] }
 0x289   :  { %v423_v18 = vpop.xlane.xlu1 %422  ;;  %v2012_v16 = vpack.c.bf16 %v844_v15, %v843_v14  ;;  %v999_v14 = vld [vmem:[#allocation10 + $0xa0] sm:$0xff]  ;;  %v1001_v15 = vld [vmem:[#allocation10 + $0xb0] sm:$0xff] }
 0x28a   :  { %v432_v19 = vadd.f32 1e-05, %v428_v17  ;;  %v425_v21 = vmul.f32 0.023809524, %v423_v18  ;;  %v845_v17 = vld [vmem:[#allocation8 + $0x50] sm:$0xff]  ;;  %v846_v18 = vld [vmem:[#allocation8 + $0x58] sm:$0xff] }
 0x28c   :  { %2174 = vrsqrt.f32 %v432_v19  ;;  %v429_v22 = vsub.f32 %v425_v21, %v427_v20  ;;  %v2016_v19 = vpack.c.bf16 %v846_v18, %v845_v17  ;;  %v847_v20 = vld [vmem:[#allocation8 + $0x60] sm:$0xff]  ;;  %v848_v21 = vld [vmem:[#allocation8 + $0x68] sm:$0xff]  ;;  %v1006_v18 = vld [vmem:[#allocation10 + $0xd8] sm:$0xff] }
 0x28d   :  { %v1004_v17 = vld [vmem:[#allocation10 + $0xc8] sm:$0xff] }
 0x28e   :  { %v433_v23 = vadd.f32 1e-05, %v429_v22  ;;  %v2020_v22 = vpack.c.bf16 %v848_v21, %v847_v20  ;;  %v1003_v20 = vld [vmem:[#allocation10 + $0xc0] sm:$0xff]  ;;  %v1005_v21 = vld [vmem:[#allocation10 + $0xd0] sm:$0xff] }
 0x290   :  { %2176 = vrsqrt.f32 %v433_v23  ;;  %v849_v23 = vld [vmem:[#allocation8 + $0x70] sm:$0xff] }
 0x296   :  { %v2175_v25 = vpop.eup %2174 }
 0x297   :  { %v436_v27 = vmul.f32 %v2175_v25, %v430_v24  ;;  %v850_v24 = vld [vmem:[#allocation8 + $0x78] sm:$0xff] }
 0x298   :  { %v2024_v25 = vpack.c.bf16 %v850_v24, %v849_v23  ;;  %v1008_v23 = vld [vmem:[#allocation10 + $0xe8] sm:$0xff]  ;;  %v1010_v24 = vld [vmem:[#allocation10 + $0xf8] sm:$0xff] }
 0x299   :  { %v444_v30 = vmul.f32 %v1555_v26, %v436_v27 }
 0x29a   :  { %v2177_v31 = vpop.eup %2176 }
 0x29b   :  { %v452_v32 = vadd.f32 %v1556_v28, %v444_v30  ;;  %v437_v33 = vmul.f32 %v2177_v31, %v431_v29 }
 0x29d   :  { %567 = vmatmul.mubr.f32.vlgmr.msra.gmra.mrb[4].mxu0 %v452_v32  ;;  %1773 = vmatprep.mubr.f32.mxu1 %v452_v32  ;;  %v445_v34 = vmul.f32 %v1555_v26, %v437_v33 }
 0x29e   :  { %572 = vmatprep.mubr.f32.mxu0 %v2403_v5 }
 0x29f   :  { %v453_v36 = vadd.f32 %v1556_v28, %v445_v34  ;;  %v980_v34 = vld [vmem:[#allocation10 + $0x8] sm:$0xff] }
 0x2a1   :  { %573 = vmatmul.mubr.f32.gmra.mrb[6].mxu0 %v453_v36  ;;  %1774 = vmatmul.mubr.f32.vlgmr.msra.gmra.mrb[4].mxu1 %v453_v36  ;;  %v982_v36 = vld [vmem:[#allocation10 + $0x18] sm:$0xff] }
 0x2a2   :  { %1999 = vmatpush3.bf16.msra.mxu1 %v1996_v2  ;;  %v996_v2 = vld [vmem:[#allocation10 + $0x88] sm:$0xff] }
 0x2a3   :  { %2001 = vmatprep.subr.bf16.mxu1 %v2000_v6 }
 0x2a6   :  { %2003 = vmatpush3.bf16.msra.mxu1 %v2000_v6  ;;  %v2044_v6 = vpack.c.bf16 %v998_v4, %v996_v2  ;;  %v1139_v2 = vld [vmem:[#allocation11 + $0x18] sm:$0xff] }
 0x2a7   :  { %2005 = vmatprep.subr.bf16.mxu1 %v2004_v10 }
 0x2aa   :  { %2007 = vmatpush3.bf16.msra.mxu1 %v2004_v10  ;;  %v2046_v10 = vpack.c.bf16 %v997_v9, %v995_v8  ;;  %v1157_v8 = vld [vmem:[#allocation11 + $0xa8] sm:$0xff] }
 0x2ab   :  { %2009 = vmatprep.subr.bf16.mxu1 %v2008_v13 }
 0x2ae   :  { %2011 = vmatpush3.bf16.msra.mxu1 %v2008_v13  ;;  %v2048_v13 = vpack.c.bf16 %v1002_v12, %v1000_v11  ;;  %v1141_v11 = vld [vmem:[#allocation11 + $0x28] sm:$0xff] }
 0x2af   :  { %2013 = vmatprep.subr.bf16.mxu1 %v2012_v16 }
 0x2b2   :  { %2015 = vmatpush3.bf16.msra.mxu1 %v2012_v16  ;;  %v2050_v16 = vpack.c.bf16 %v1001_v15, %v999_v14  ;;  %v1159_v14 = vld [vmem:[#allocation11 + $0xb8] sm:$0xff] }
 0x2b3   :  { %2017 = vmatprep.subr.bf16.mxu1 %v2016_v19 }
 0x2b6   :  { %2019 = vmatpush3.bf16.msra.mxu1 %v2016_v19  ;;  %v2052_v19 = vpack.c.bf16 %v1006_v18, %v1004_v17  ;;  %v1143_v17 = vld [vmem:[#allocation11 + $0x38] sm:$0xff] }
 0x2b7   :  { %2021 = vmatprep.subr.bf16.mxu1 %v2020_v22 }
 0x2ba   :  { %2023 = vmatpush3.bf16.msra.mxu1 %v2020_v22  ;;  %v2054_v22 = vpack.c.bf16 %v1005_v21, %v1003_v20  ;;  %v1161_v20 = vld [vmem:[#allocation11 + $0xc8] sm:$0xff] }
 0x2bb   :  { %2025 = vmatprep.subr.bf16.mxu1 %v2024_v25 }
 0x2be   :  { %2027 = vmatpush3.bf16.msra.mxu1 %v2024_v25  ;;  %v2056_v25 = vpack.c.bf16 %v1010_v24, %v1008_v23  ;;  %v1145_v23 = vld [vmem:[#allocation11 + $0x48] sm:$0xff]  ;;  %v1162_v24 = vld [vmem:[#allocation11 + $0xd0] sm:$0xff] }
 0x370   :  { %v568_v37 = vpop.f32.mrb[4].mxu0 }
 0x371   :  { %v570_v38 = vpop.f32.mrb[5].mxu0  ;;  %1780 = vmatprep.mubr.f32.mxu0 %v568_v37  ;;  %v979_v37 = vld [vmem:[#allocation10] sm:$0xff] }
 0x374   :  { %v574_v39 = vpop.f32.mrb[6].mxu0  ;;  %v1775_v40 = vpop.f32.mrb[4].mxu1 }
 0x375   :  { %v576_v41 = vpop.f32.mrb[7].mxu0  ;;  %v645_v42 = vpop.f32.mrb[5].mxu1 }
 0x376   :  { %v1988_v43 = vpack.c.bf16 %v576_v41, %v570_v38  ;;  %v1992_v44 = vpack.c.bf16 %v1775_v40, %v645_v42  ;;  %v2028_v38 = vpack.c.bf16 %v982_v36, %v980_v34  ;;  %v984_v40 = vld [vmem:[#allocation10 + $0x28] sm:$0xff]  ;;  %v986_v41 = vld [vmem:[#allocation10 + $0x38] sm:$0xff] }
 0x378   :  { %1989 = vmatprep.subr.bf16.mxu0 %v1988_v43 }
 0x379   :  { %1991 = vmatpush3.bf16.xpose.msra.mxu0 %v1988_v43  ;;  %v2032_v43 = vpack.c.bf16 %v986_v41, %v984_v40 }
 0x37a   :  { %1993 = vmatprep.subr.bf16.mxu0 %v1992_v44 }
 0x380   :  { %1781 = vmatmul.mubr.f32.vlgmr.msra.gmra.mrb[8].mxu0 %v574_v39  ;;  %v981_v39 = vld [vmem:[#allocation10 + $0x10] sm:$0xff] }
 0x381   :  { %1995 = vmatpush3.bf16.msra.mxu0 %v1992_v44  ;;  %v2030_v42 = vpack.c.bf16 %v981_v39, %v979_v37  ;;  %v1559_v44 = vld [vmem:[%s2751_s6] ss:$0 sm:$0xff] }
 0x382   :  { %2029 = vmatprep.subr.bf16.mxu0 %v2028_v38 }
 0x453   :  { %v1782_v46 = vpop.f32.mrb[8].mxu0 }
 0x454   :  { %v722_v48 = vpop.f32.mrb[9].mxu0  ;;  %v728_v50 = vadd.f32 %v1782_v46, %v655_v47 }
 0x455   :  { %v723_v49 = vadd.f32 %v722_v48, %v654_v45 }
 0x456   :  { %v735_v52 = vsel %vm731_vm8, %v728_v50, -inf }
 0x457   :  { %v732_v51 = vsel %vm731_vm8, %v723_v49, -inf }
 0x458   :  { %733 = vmax.xlane.f32.xlu1 %v732_v51 }
 0x45c   :  { %736 = vmax.xlane.f32.xlu1 %v735_v52 }
 0x4e5   :  { %v734_v53 = vpop.xlane.xlu1 %733 }
 0x4e6   :  { %v738_v54 = vsub.f32 %v723_v49, %v734_v53  ;;  %v983_v53 = vld [vmem:[#allocation10 + $0x20] sm:$0xff] }
 0x4e8   :  { %v740_v55 = vmul.f32 1.442695, %v738_v54  ;;  %v985_v54 = vld [vmem:[#allocation10 + $0x30] sm:$0xff] }
 0x4e9   :  { %v737_v56 = vpop.xlane.xlu1 %736 }
 0x4ea   :  { %2178 = vpow2.f32 %v740_v55  ;;  %v739_v57 = vsub.f32 %v728_v50, %v737_v56  ;;  %v2034_v55 = vpack.c.bf16 %v985_v54, %v983_v53  ;;  %v990_v56 = vld [vmem:[#allocation10 + $0x58] sm:$0xff]  ;;  %v1560_v54 = vld [vmem:[%s2754_s9] ss:$0 sm:$0xff] }
 0x4ec   :  { %v742_v58 = vmul.f32 1.442695, %v739_v57  ;;  %v987_v57 = vld [vmem:[#allocation10 + $0x40] sm:$0xff] }
 0x4ee   :  { %2180 = vpow2.f32 %v742_v58  ;;  %v989_v58 = vld [vmem:[#allocation10 + $0x50] sm:$0xff] }
 0x4f4   :  { %v2179_v59 = vpop.eup %2178 }
 0x4f5   :  { %1787 = vmatprep.mubr.msk.f32.mxu0 %vm731_vm8, %v2179_v59  ;;  %v744_v60 = vsel %vm731_vm8, %v2179_v59, 0.0  ;;  %v2038_v59 = vpack.c.bf16 %v989_v58, %v987_v57 }
 0x4f6   :  { %745 = vadd.xlane.f32.xlu1 %v744_v60  ;;  %v992_v60 = vld [vmem:[#allocation10 + $0x68] sm:$0xff] }
 0x4f8   :  { %v2181_v61 = vpop.eup %2180 }
 0x4f9   :  { %1788 = vmatmul.mubr.msk.f32.vlgmr.msra.gmra.mrb[10].mxu0 %vm731_vm8, %v2181_v61  ;;  %v747_v62 = vsel %vm731_vm8, %v2181_v61, 0.0  ;;  %v994_v61 = vld [vmem:[#allocation10 + $0x78] sm:$0xff] }
 0x4fa   :  { %748 = vadd.xlane.f32.xlu1 %v747_v62  ;;  %1087 = vmatprep.mubr.f32.mxu0 %v2403_v5  ;;  %v2040_v62 = vpack.c.bf16 %v994_v61, %v992_v60 }
 0x4fb   :  { %2031 = vmatpush1.bf16.msra.mxu0 %v2030_v42 }
 0x4fc   :  { %2033 = vmatprep.subr.bf16.mxu0 %v2032_v43 }
 0x4ff   :  { %2035 = vmatpush1.bf16.msra.mxu0 %v2034_v55 }
 0x583   :  { %v746_v26 = vpop.xlane.xlu1 %745 }
 0x584   :  { %2182 = vrcp.f32 %v746_v26  ;;  %v1007_v26 = vld [vmem:[#allocation10 + $0xe0] sm:$0xff] }
 0x587   :  { %v749_v27 = vpop.xlane.xlu1 %748 }
 0x588   :  { %2184 = vrcp.f32 %v749_v27  ;;  %v1009_v27 = vld [vmem:[#allocation10 + $0xf0] sm:$0xff] }
 0x58e   :  { %v2183_v29 = vpop.eup %2182 }
 0x592   :  { %v2185_v31 = vpop.eup %2184 }
 0x5cc   :  { %v1789_v28 = vpop.f32.mrb[10].mxu0 }
 0x5cd   :  { %v822_v30 = vpop.f32.mrb[11].mxu0  ;;  %v834_v33 = vmul.f32 %v2185_v31, %v1789_v28  ;;  %v2058_v28 = vpack.c.bf16 %v1009_v27, %v1007_v26  ;;  %v1136_v31 = vld [vmem:[#allocation11] sm:$0xff]  ;;  %v1163_v26 = vld [vmem:[#allocation11 + $0xd8] sm:$0xff]  ;;  %v1146_v27 = vld [vmem:[#allocation11 + $0x50] sm:$0xff] }
 0x5ce   :  { %v833_v32 = vmul.f32 %v2183_v29, %v822_v30  ;;  %v1152_v29 = vld [vmem:[#allocation11 + $0x80] sm:$0xff]  ;;  %v1153_v30 = vld [vmem:[#allocation11 + $0x88] sm:$0xff] }
 0x5d0   :  { %1822 = vmatprep.mubr.f32.mxu1 %v833_v32  ;;  %v2060_v32 = vpack.c.bf16 %v1153_v30, %v1152_v29  ;;  %v2080_v29 = vpack.c.bf16 %v1163_v26, %v1162_v24  ;;  %v1164_v30 = vld [vmem:[#allocation11 + $0xe0] sm:$0xff] }
 0x5d1   :  { %1823 = vmatmul.mubr.f32.vlgmr.msra.gmra.mrb[6].mxu1 %v834_v33  ;;  %v1137_v33 = vld [vmem:[#allocation11 + $0x8] sm:$0xff] }
 0x5d2   :  { %v2062_v34 = vpack.c.bf16 %v1137_v33, %v1136_v31  ;;  %2061 = vmatprep.subr.bf16.mxu1 %v2060_v32  ;;  %v1165_v31 = vld [vmem:[#allocation11 + $0xe8] sm:$0xff] }
 0x5d3   :  { %v2084_v33 = vpack.c.bf16 %v1165_v31, %v1164_v30 }
 0x5d4   :  { %2063 = vmatpush3.bf16.msra.mxu1 %v2062_v34  ;;  %v1148_v34 = vld [vmem:[#allocation11 + $0x60] sm:$0xff] }
 0x6a4   :  { %v1824_v45 = vpop.f32.mrb[6].mxu1 }
 0x6a5   :  { %v930_v46 = vadd.f32 %v1824_v45, %v1559_v44  ;;  %v924_v47 = vpop.f32.mrb[7].mxu1 }
 0x6a6   :  { %v925_v48 = vadd.f32 %v1559_v44, %v924_v47 }
 0x6a7   :  { %v2665_v49 = vadd.f32 %v930_v46, %v2631_v7  ;;  %v988_v7 = vld [vmem:[#allocation10 + $0x48] sm:$0xff] }
 0x6a8   :  { %v2668_v50 = vadd.f32 %v925_v48, %v2628_v3  ;;  %v2036_v3 = vpack.c.bf16 %v990_v56, %v988_v7  ;;  %v1561_v7 = vld [vmem:[%s2755_s10] ss:$0 sm:$0xff] }
 0x6a9   :  { %v944_v51 = vmul.f32 %v2665_v49, %v2665_v49 }
 0x6aa   :  { %937 = vadd.xlane.f32.xlu1 %v2668_v50  ;;  %v943_v52 = vmul.f32 %v2668_v50, %v2668_v50  ;;  %2037 = vmatprep.subr.bf16.mxu0 %v2036_v3 }
 0x6ab   :  { %947 = vadd.xlane.f32.xlu0 %v944_v51  ;;  %2039 = vmatpush1.bf16.msra.mxu0 %v2038_v59 }
 0x6ac   :  { %2041 = vmatprep.subr.bf16.mxu0 %v2040_v62  ;;  %v1154_v62 = vld [vmem:[#allocation11 + $0x90] sm:$0xff] }
 0x6ad   :  { %v2064_v0 = vpack.c.bf16 %v1155_v63, %v1154_v62 }
 0x6ae   :  { %945 = vadd.xlane.f32.xlu1 %v943_v52 }
 0x6af   :  { %2043 = vmatpush1.bf16.msra.mxu0 %v2042_v1  ;;  %v1138_v1 = vld [vmem:[#allocation11 + $0x10] sm:$0xff]  ;;  %2065 = vmatprep.subr.bf16.mxu1 %v2064_v0 }
 0x6b0   :  { %2045 = vmatprep.subr.bf16.mxu0 %v2044_v6  ;;  %v2066_v4 = vpack.c.bf16 %v1139_v2, %v1138_v1  ;;  %v1156_v6 = vld [vmem:[#allocation11 + $0xa0] sm:$0xff] }
 0x6b1   :  { %v2068_v9 = vpack.c.bf16 %v1157_v8, %v1156_v6 }
 0x6b2   :  { %939 = vadd.xlane.f32.xlu1 %v2665_v49  ;;  %2067 = vmatpush3.bf16.msra.mxu1 %v2066_v4 }
 0x6b3   :  { %2047 = vmatpush1.bf16.msra.mxu0 %v2046_v10  ;;  %v1140_v10 = vld [vmem:[#allocation11 + $0x20] sm:$0xff]  ;;  %2069 = vmatprep.subr.bf16.mxu1 %v2068_v9 }
 0x6b4   :  { %2049 = vmatprep.subr.bf16.mxu0 %v2048_v13  ;;  %v2070_v12 = vpack.c.bf16 %v1141_v11, %v1140_v10  ;;  %v1158_v13 = vld [vmem:[#allocation11 + $0xb0] sm:$0xff] }
 0x6b5   :  { %v2072_v15 = vpack.c.bf16 %v1159_v14, %v1158_v13 }
 0x6b6   :  { %2071 = vmatpush3.bf16.msra.mxu1 %v2070_v12 }
 0x6b7   :  { %2051 = vmatpush1.bf16.msra.mxu0 %v2050_v16  ;;  %v1142_v16 = vld [vmem:[#allocation11 + $0x30] sm:$0xff]  ;;  %2073 = vmatprep.subr.bf16.mxu1 %v2072_v15 }
 0x6b8   :  { %2053 = vmatprep.subr.bf16.mxu0 %v2052_v19  ;;  %v2074_v18 = vpack.c.bf16 %v1143_v17, %v1142_v16  ;;  %v1160_v19 = vld [vmem:[#allocation11 + $0xc0] sm:$0xff] }
 0x6b9   :  { %v2076_v21 = vpack.c.bf16 %v1161_v20, %v1160_v19 }
 0x6ba   :  { %2075 = vmatpush3.bf16.msra.mxu1 %v2074_v18 }
 0x6bb   :  { %2055 = vmatpush1.bf16.msra.mxu0 %v2054_v22  ;;  %v1144_v22 = vld [vmem:[#allocation11 + $0x40] sm:$0xff]  ;;  %2077 = vmatprep.subr.bf16.mxu1 %v2076_v21 }
 0x6bc   :  { %2057 = vmatprep.subr.bf16.mxu0 %v2056_v25  ;;  %v2078_v25 = vpack.c.bf16 %v1145_v23, %v1144_v22 }
 0x6be   :  { %2079 = vmatpush3.bf16.msra.mxu1 %v2078_v25 }
 0x6bf   :  { %2059 = vmatpush1.bf16.msra.mxu0 %v2058_v28  ;;  %v1147_v28 = vld [vmem:[#allocation11 + $0x58] sm:$0xff]  ;;  %2081 = vmatprep.subr.bf16.mxu1 %v2080_v29 }
 0x6c0   :  { %v2082_v32 = vpack.c.bf16 %v1147_v28, %v1146_v27 }
 0x6c2   :  { %2083 = vmatpush3.bf16.msra.mxu1 %v2082_v32  ;;  %v1297_v32 = vld [vmem:[#allocation13 + $0x8] sm:$0xff] }
 0x6c3   :  { %2085 = vmatprep.subr.bf16.mxu1 %v2084_v33  ;;  %v1300_v33 = vld [vmem:[#allocation13 + $0x20] sm:$0xff] }
 0x737   :  { %v938_v36 = vpop.xlane.xlu1 %937 }
 0x738   :  { %v941_v37 = vmul.f32 0.023809524, %v938_v36  ;;  %v948_v42 = vpop.xlane.xlu0 %947  ;;  %v1149_v36 = vld [vmem:[#allocation11 + $0x68] sm:$0xff] }
 0x739   :  { %v950_v46 = vmul.f32 0.023809524, %v948_v42  ;;  %v1151_v42 = vld [vmem:[#allocation11 + $0x78] sm:$0xff] }
 0x73a   :  { %v951_v39 = vmul.f32 %v941_v37, %v941_v37  ;;  %v955_v52 = vsub.f32 %v2668_v50, %v941_v37  ;;  %v1166_v37 = vld [vmem:[#allocation11 + $0xf0] sm:$0xff] }
 0x73b   :  { %v946_v38 = vpop.xlane.xlu1 %945 }
 0x73c   :  { %v949_v40 = vmul.f32 0.023809524, %v946_v38  ;;  %v1167_v38 = vld [vmem:[#allocation11 + $0xf8] sm:$0xff] }
 0x73e   :  { %v953_v41 = vsub.f32 %v949_v40, %v951_v39  ;;  %v2086_v39 = vpack.c.bf16 %v1149_v36, %v1148_v34  ;;  %v2088_v40 = vpack.c.bf16 %v1167_v38, %v1166_v37  ;;  %v1296_v34 = vld [vmem:[#allocation13] sm:$0xff]  ;;  %v2092_v36 = vpack.c.bf16 %v1300_v33, %v1297_v32  ;;  %v1299_v37 = vld [vmem:[#allocation13 + $0x18] sm:$0xff]  ;;  %v1322_v33 = vld [vmem:[#allocation13 + $0xd0] sm:$0xff] }
 0x73f   :  { %v940_v43 = vpop.xlane.xlu1 %939  ;;  %v1303_v38 = vld [vmem:[#allocation13 + $0x38] sm:$0xff] }
 0x740   :  { %v957_v44 = vadd.f32 1e-05, %v953_v41  ;;  %v942_v45 = vmul.f32 0.023809524, %v940_v43  ;;  %v1150_v41 = vld [vmem:[#allocation11 + $0x70] sm:$0xff]  ;;  %2087 = vmatpush3.bf16.msra.mxu1 %v2086_v39  ;;  %2093 = vmatprep.subr.bf16.mxu0 %v2092_v36 }
 0x741   :  { %v2090_v43 = vpack.c.bf16 %v1151_v42, %v1150_v41  ;;  %2089 = vmatprep.subr.bf16.mxu1 %v2088_v40  ;;  %v1306_v39 = vld [vmem:[#allocation13 + $0x50] sm:$0xff]  ;;  %v2094_v40 = vpack.c.bf16 %v1299_v37, %v1296_v34  ;;  %v1325_v34 = vld [vmem:[#allocation13 + $0xe8] sm:$0xff] }
 0x742   :  { %2186 = vrsqrt.f32 %v957_v44  ;;  %v952_v47 = vmul.f32 %v942_v45, %v942_v45  ;;  %v956_v3 = vsub.f32 %v2665_v49, %v942_v45  ;;  %v2687_v44 = vshrl.u32 %v160_v35, 7  ;;  %v1302_v42 = vld [vmem:[#allocation13 + $0x30] sm:$0xff]  ;;  %v1333_v37 = vld [vmem:[#allocation13 + $0x128] sm:$0xff] }
 0x743   :  { %v2096_v41 = vpack.c.bf16 %v1306_v39, %v1303_v38  ;;  %v2140_v36 = vpack.c.bf16 %v1325_v34, %v1322_v33  ;;  %v1336_v38 = vld [vmem:[#allocation13 + $0x140] sm:$0xff] }
 0x744   :  { %v954_v48 = vsub.f32 %v950_v46, %v952_v47  ;;  %2091 = vmatpush3.bf16.msra.mxu1 %v2090_v43  ;;  %v1015_v45 = vsub.s32 0, %v2687_v44  ;;  %v1011_v46 = vld [vmem:[%s2757_s12] sm:$0x3]  ;;  %v1019_v47 = vsub.s32 1, %v2687_v44  ;;  %v1305_v43 = vld [vmem:[#allocation13 + $0x48] sm:$0xff]  ;;  %v2116_v39 = vpack.c.bf16 %v1336_v38, %v1333_v37 }
 0x746   :  { %v958_v51 = vadd.f32 1e-05, %v954_v48  ;;  %v1016_v48 = vrot.slane %v1011_v46, %v1015_v45 }
 0x748   :  { %2188 = vrsqrt.f32 %v958_v51  ;;  %v1020_v51 = vrot.slane %v1011_v46, %v1019_v47  ;;  %v1298_v46 = vld [vmem:[#allocation13 + $0x10] sm:$0xff] }
 0x74c   :  { %v2187_v53 = vpop.eup %2186 }
 0x74d   :  { %v961_v55 = vmul.f32 %v2187_v53, %v955_v52 }
 0x74f   :  { %v969_v56 = vmul.f32 %v1560_v54, %v961_v55 }
 0x751   :  { %v977_v57 = vadd.f32 %v1561_v7, %v969_v56 }
 0x752   :  { %v2189_v58 = vpop.eup %2188 }
 0x753   :  { %v962_v59 = vmul.f32 %v2189_v58, %v956_v3  ;;  %1088 = vmatmul.mubr.f32.vlgmr.msra.gmra.mrb[12].mxu0 %v977_v57 }
 0x754   :  { %1093 = vmatprep.mubr.f32.mxu0 %v2403_v5  ;;  %2095 = vmatpush1.bf16.msra.mxu0 %v2094_v40  ;;  %v1332_v40 = vld [vmem:[#allocation13 + $0x120] sm:$0xff] }
 0x755   :  { %v970_v60 = vmul.f32 %v1560_v54, %v962_v59  ;;  %2097 = vmatprep.subr.bf16.mxu0 %v2096_v41  ;;  %v1335_v41 = vld [vmem:[#allocation13 + $0x138] sm:$0xff] }
 0x757   :  { %v978_v61 = vadd.f32 %v1561_v7, %v970_v60 }
 0x759   :  { %1094 = vmatmul.mubr.f32.gmra.mrb[14].mxu0 %v978_v61 }
 0x75a   :  { %1425 = vmatprep.mubr.f32.mxu0 %v2403_v5 }
 0x826   :  { %v1089_v52 = vpop.f32.mrb[12].mxu0 }
 0x827   :  { %v1090_v53 = vadd.f32 %v1089_v52, %v1016_v48  ;;  %v1091_v54 = vpop.f32.mrb[13].mxu0 }
 0x828   :  { %v1092_v55 = vadd.f32 %v1091_v54, %v1020_v51  ;;  %v1562_v54 = vld [vmem:[%s2759_s14] ss:$0 sm:$0xff] }
 0x829   :  { %v1104_v35 = vmul.f32 0.044715, %v1090_v53  ;;  %v1100_v21 = vmul.f32 0.5, %v1090_v53 }
 0x82a   :  { %v1105_v7 = vmul.f32 0.044715, %v1092_v55  ;;  %v1101_v19 = vmul.f32 0.5, %v1092_v55 }
 0x82b   :  { %v1108_v56 = vmul.f32 %v1104_v35, %v1090_v53 }
 0x82c   :  { %v1109_v3 = vmul.f32 %v1105_v7, %v1092_v55  ;;  %v1095_v57 = vpop.f32.mrb[14].mxu0 }
 0x82d   :  { %v1112_v58 = vmul.f32 %v1108_v56, %v1090_v53  ;;  %v1096_v59 = vadd.f32 %v1095_v57, %v1016_v48  ;;  %v1097_v60 = vpop.f32.mrb[15].mxu0  ;;  %v1301_v48 = vld [vmem:[#allocation13 + $0x28] sm:$0xff] }
 0x82e   :  { %v1098_v61 = vadd.f32 %v1097_v60, %v1020_v51  ;;  %v1113_v62 = vmul.f32 %v1109_v3, %v1092_v55  ;;  %v2098_v51 = vpack.c.bf16 %v1305_v43, %v1302_v42  ;;  %v2124_v52 = vpack.c.bf16 %v1301_v48, %v1298_v46  ;;  %v1328_v43 = vld [vmem:[#allocation13 + $0x100] sm:$0xff]  ;;  %v1331_v46 = vld [vmem:[#allocation13 + $0x118] sm:$0xff] }
 0x82f   :  { %v1116_v63 = vadd.f32 %v1112_v58, %v1090_v53  ;;  %v1106_v0 = vmul.f32 0.044715, %v1096_v59  ;;  %v1102_v29 = vmul.f32 0.5, %v1096_v59  ;;  %v2118_v42 = vpack.c.bf16 %v1335_v41, %v1332_v40 }
 0x830   :  { %v1107_v1 = vmul.f32 0.044715, %v1098_v61  ;;  %v1117_v2 = vadd.f32 %v1113_v62, %v1092_v55  ;;  %v1103_v27 = vmul.f32 0.5, %v1098_v61  ;;  %2125 = vmatprep.subr.bf16.mxu1 %v2124_v52  ;;  %2099 = vmatpush1.bf16.msra.mxu0 %v2098_v51  ;;  %v2144_v48 = vpack.c.bf16 %v1331_v46, %v1328_v43  ;;  %v1339_v51 = vld [vmem:[#allocation13 + $0x158] sm:$0xff] }
 0x831   :  { %v1110_v4 = vmul.f32 %v1106_v0, %v1096_v59  ;;  %v1120_v6 = vmul.f32 0.7978845, %v1116_v63  ;;  %v1312_v63 = vld [vmem:[#allocation13 + $0x80] sm:$0xff] }
 0x832   :  { %v1111_v8 = vmul.f32 %v1107_v1, %v1098_v61  ;;  %v1121_v9 = vmul.f32 0.7978845, %v1117_v2  ;;  %v1308_v1 = vld [vmem:[#allocation13 + $0x60] sm:$0xff]  ;;  %v1311_v2 = vld [vmem:[#allocation13 + $0x78] sm:$0xff] }
 0x833   :  { %2190 = vtanh.f32 %v1120_v6  ;;  %v1114_v10 = vmul.f32 %v1110_v4, %v1096_v59  ;;  %v2102_v4 = vpack.c.bf16 %v1311_v2, %v1308_v1  ;;  %v1304_v6 = vld [vmem:[#allocation13 + $0x40] sm:$0xff] }
 0x834   :  { %2192 = vtanh.f32 %v1121_v9  ;;  %v1115_v11 = vmul.f32 %v1111_v8, %v1098_v61  ;;  %v1307_v8 = vld [vmem:[#allocation13 + $0x58] sm:$0xff] }
 0x835   :  { %v1118_v12 = vadd.f32 %v1114_v10, %v1096_v59  ;;  %v2128_v9 = vpack.c.bf16 %v1307_v8, %v1304_v6  ;;  %v1315_v10 = vld [vmem:[#allocation13 + $0x98] sm:$0xff] }
 0x836   :  { %v1119_v13 = vadd.f32 %v1115_v11, %v1098_v61 }
 0x837   :  { %v1122_v14 = vmul.f32 0.7978845, %v1118_v12  ;;  %v1314_v12 = vld [vmem:[#allocation13 + $0x90] sm:$0xff] }
 0x838   :  { %v1123_v15 = vmul.f32 0.7978845, %v1119_v13  ;;  %v1317_v13 = vld [vmem:[#allocation13 + $0xa8] sm:$0xff] }
 0x839   :  { %2194 = vtanh.f32 %v1122_v14  ;;  %v2106_v14 = vpack.c.bf16 %v1317_v13, %v1314_v12 }
 0x83a   :  { %2196 = vtanh.f32 %v1123_v15  ;;  %v1310_v15 = vld [vmem:[#allocation13 + $0x70] sm:$0xff] }
 0x83d   :  { %v2191_v16 = vpop.eup %2190 }
 0x83e   :  { %v2193_v17 = vpop.eup %2192  ;;  %v1128_v18 = vadd.f32 1.0, %v2191_v16  ;;  %v1313_v16 = vld [vmem:[#allocation13 + $0x88] sm:$0xff] }
 0x83f   :  { %v1129_v20 = vadd.f32 1.0, %v2193_v17  ;;  %v2132_v17 = vpack.c.bf16 %v1313_v16, %v1310_v15  ;;  %v1563_v15 = vld [vmem:[%s2760_s15] ss:$0 sm:$0xff] }
 0x840   :  { %v1132_v23 = vmul.f32 %v1128_v18, %v1100_v21  ;;  %v1321_v18 = vld [vmem:[#allocation13 + $0xc8] sm:$0xff]  ;;  %v1320_v21 = vld [vmem:[#allocation13 + $0xc0] sm:$0xff] }
 0x841   :  { %v1133_v22 = vmul.f32 %v1129_v20, %v1101_v19  ;;  %v1324_v19 = vld [vmem:[#allocation13 + $0xe0] sm:$0xff] }
 0x842   :  { %v2108_v20 = vpack.c.bf16 %v1324_v19, %v1321_v18 }
 0x843   :  { %v2195_v24 = vpop.eup %2194  ;;  %1239 = vmatprep.mubr.f32.mxu1 %v1133_v22  ;;  %v1323_v22 = vld [vmem:[#allocation13 + $0xd8] sm:$0xff] }
 0x844   :  { %v2197_v25 = vpop.eup %2196  ;;  %1240 = vmatmul.mubr.f32.vlgmr.msra.gmra.mrb[8].mxu1 %v1132_v23  ;;  %v1130_v26 = vadd.f32 1.0, %v2195_v24  ;;  %v2110_v23 = vpack.c.bf16 %v1323_v22, %v1320_v21  ;;  %v1316_v24 = vld [vmem:[#allocation13 + $0xa0] sm:$0xff] }
 0x845   :  { %v1131_v28 = vadd.f32 1.0, %v2197_v25  ;;  %2127 = vmatpush3.bf16.msra.mxu1 %v2124_v52  ;;  %v1319_v25 = vld [vmem:[#allocation13 + $0xb8] sm:$0xff]  ;;  %v1342_v52 = vld [vmem:[#allocation13 + $0x170] sm:$0xff] }
 0x846   :  { %v1134_v31 = vmul.f32 %v1130_v26, %v1102_v29  ;;  %2129 = vmatprep.subr.bf16.mxu1 %v2128_v9  ;;  %v2136_v26 = vpack.c.bf16 %v1319_v25, %v1316_v24  ;;  %v1344_v24 = vld [vmem:[%s2763_s18] sm:$0x7] }
 0x847   :  { %v1135_v30 = vmul.f32 %v1131_v28, %v1103_v27  ;;  %v1327_v27 = vld [vmem:[#allocation13 + $0xf8] sm:$0xff]  ;;  %v1330_v28 = vld [vmem:[#allocation13 + $0x110] sm:$0xff]  ;;  %v1349_v25 = vrot.slane %v1344_v24, %v1015_v45 }
 0x848   :  { %v2112_v29 = vpack.c.bf16 %v1330_v28, %v1327_v27 }
 0x849   :  { %1244 = vmatprep.mubr.f32.mxu1 %v1135_v30  ;;  %2131 = vmatpush3.bf16.msra.mxu1 %v2128_v9  ;;  %v1326_v30 = vld [vmem:[#allocation13 + $0xf0] sm:$0xff] }
 0x84a   :  { %1245 = vmatmul.mubr.f32.gmra.mrb[10].mxu1 %v1134_v31  ;;  %2133 = vmatprep.subr.bf16.mxu1 %v2132_v17  ;;  %v1329_v31 = vld [vmem:[#allocation13 + $0x108] sm:$0xff] }
 0x84b   :  { %v2114_v32 = vpack.c.bf16 %v1329_v31, %v1326_v30 }
 0x84d   :  { %2135 = vmatpush3.bf16.msra.mxu1 %v2132_v17  ;;  %v1564_v17 = vld [vmem:[%s2761_s16] ss:$0 sm:$0xff]  ;;  %s2404_s16 = smov [#allocation14]  }
 0x84e   :  { %2137 = vmatprep.subr.bf16.mxu1 %v2136_v26  ;;  %s1524_s5 = sshll.u32 %s2404_s16, 4  ;;  %s1525_s5 = int_to_ptr.vmem [resolvable:$true] %s1524_s5 }
 0x84f   :  { %s2356_s18 = scalar_lea.vmem %s1525_s5, 768  ;;  %p2361_p1 = scmp.lt.s32.totalorder %s1525_s5, %s1525_s5 }
 0x850   :  { %p2357_p0 = scmp.ne.s32.totalorder %s1525_s5, %s2356_s18  ;;  %p2362_p2 = scmp.lt.s32.totalorder %s2356_s18, %s2356_s18 }
 0x851   :  { %2139 = vmatpush3.bf16.msra.mxu1 %v2136_v26  ;;  %v1356_v26 = vsub.s32 2, %v2687_v44 }
 0x852   :  { %2141 = vmatprep.subr.bf16.mxu1 %v2140_v36  ;;  %p2363_p3 = por %p2362_p2, %p2361_p1 }
 0x853   :  { %v1357_v30 = vrot.slane %v1344_v24, %v1356_v26 }
 0x854   :  { %p2364_p4 = pnand %p2363_p3, %p2357_p0 }
 0x855   :  { %2143 = vmatpush3.bf16.msra.mxu1 %v2140_v36 }
 0x856   :  { %2145 = vmatprep.subr.bf16.mxu1 %v2144_v48 }
 0x859   :  { %2147 = vmatpush3.bf16.msra.mxu1 %v2144_v48 }
 0x917   :  { %v1717_v53 = vpop.f32.mrb[8].mxu1 }
 0x918   :  { %v1718_v55 = vpop.f32.mrb[9].mxu1 }
 0x919   :  { %v1719_v35 = vadd.f32 %v1718_v55, %v1717_v53  ;;  %v2120_v53 = vpack.c.bf16 %v1342_v52, %v1339_v51  ;;  %v1341_v55 = vld [vmem:[#allocation13 + $0x168] sm:$0xff] }
 0x91b   :  { %v1242_v7 = vadd.f32 %v1719_v35, %v1562_v54  ;;  %v1334_v35 = vld [vmem:[#allocation13 + $0x130] sm:$0xff] }
 0x91d   :  { %v1720_v56 = vpop.f32.mrb[10].mxu1  ;;  %v2702_v3 = vadd.f32 %v1242_v7, %v2668_v50  ;;  %v1309_v50 = vld [vmem:[#allocation13 + $0x68] sm:$0xff] }
 0x91e   :  { %v1721_v57 = vpop.f32.mrb[11].mxu1  ;;  %v2100_v0 = vpack.c.bf16 %v1312_v63, %v1309_v50 }
 0x91f   :  { %v1722_v58 = vadd.f32 %v1721_v57, %v1720_v56  ;;  %1254 = vadd.xlane.f32.xlu1 %v2702_v3  ;;  %v1260_v59 = vmul.f32 %v2702_v3, %v2702_v3  ;;  %v1337_v56 = vld [vmem:[#allocation13 + $0x148] sm:$0xff] }
 0x920   :  { %2101 = vmatprep.subr.bf16.mxu0 %v2100_v0  ;;  %v2148_v57 = vpack.c.bf16 %v1337_v56, %v1334_v35 }
 0x921   :  { %v1247_v60 = vadd.f32 %v1722_v58, %v1562_v54  ;;  %1262 = vadd.xlane.f32.xlu0 %v1260_v59  ;;  %2103 = vmatpush1.bf16.msra.mxu0 %v2102_v4  ;;  %v1338_v54 = vld [vmem:[#allocation13 + $0x150] sm:$0xff]  ;;  %v1340_v58 = vld [vmem:[#allocation13 + $0x160] sm:$0xff]  ;;  %v1343_v59 = vld [vmem:[#allocation13 + $0x178] sm:$0xff] }
 0x922   :  { %v2122_v7 = vpack.c.bf16 %v1341_v55, %v1338_v54  ;;  %2149 = vmatprep.subr.bf16.mxu1 %v2148_v57 }
 0x923   :  { %v2708_v61 = vadd.f32 %v1247_v60, %v2665_v49  ;;  %v1318_v49 = vld [vmem:[#allocation13 + $0xb0] sm:$0xff]  ;;  %2151 = vmatpush3.bf16.msra.mxu1 %v2148_v57  ;;  %v2152_v60 = vpack.c.bf16 %v1343_v59, %v1340_v58 }
 0x924   :  { %v2104_v11 = vpack.c.bf16 %v1318_v49, %v1315_v10 }
 0x925   :  { %1256 = vadd.xlane.f32.xlu1 %v2708_v61  ;;  %v1261_v62 = vmul.f32 %v2708_v61, %v2708_v61  ;;  %2153 = vmatprep.subr.bf16.mxu1 %v2152_v60 }
 0x926   :  { %2105 = vmatprep.subr.bf16.mxu0 %v2104_v11 }
 0x927   :  { %1264 = vadd.xlane.f32.xlu0 %v1261_v62  ;;  %2107 = vmatpush1.bf16.msra.mxu0 %v2106_v14 }
 0x928   :  { %2109 = vmatprep.subr.bf16.mxu0 %v2108_v20  ;;  %2155 = vmatpush3.bf16.msra.mxu1 %v2152_v60 }
 0x92b   :  { %2111 = vmatpush1.bf16.msra.mxu0 %v2110_v23 }
 0x92c   :  { %2113 = vmatprep.subr.bf16.mxu0 %v2112_v29 }
 0x92f   :  { %2115 = vmatpush1.bf16.msra.mxu0 %v2114_v32 }
 0x930   :  { %2117 = vmatprep.subr.bf16.mxu0 %v2116_v39 }
 0x933   :  { %2119 = vmatpush1.bf16.msra.mxu0 %v2118_v42 }
 0x934   :  { %2121 = vmatprep.subr.bf16.mxu0 %v2120_v53 }
 0x937   :  { %2123 = vmatpush1.bf16.msra.mxu0 %v2122_v7 }
 0x9ac   :  { %v1255_v62 = vpop.xlane.xlu1 %1254 }
 0x9ad   :  { %v1258_v50 = vmul.f32 0.023809524, %v1255_v62 }
 0x9ae   :  { %v1263_v63 = vpop.xlane.xlu0 %1262 }
 0x9af   :  { %v1268_v0 = vmul.f32 %v1258_v50, %v1258_v50  ;;  %v1266_v1 = vmul.f32 0.023809524, %v1263_v63  ;;  %v1272_v13 = vsub.f32 %v2702_v3, %v1258_v50 }
 0x9b1   :  { %v1270_v2 = vsub.f32 %v1266_v1, %v1268_v0 }
 0x9b2   :  { %v1257_v4 = vpop.xlane.xlu1 %1256 }
 0x9b3   :  { %v1274_v6 = vadd.f32 1e-05, %v1270_v2  ;;  %v1259_v8 = vmul.f32 0.023809524, %v1257_v4 }
 0x9b4   :  { %v1265_v9 = vpop.xlane.xlu0 %1264 }
 0x9b5   :  { %2198 = vrsqrt.f32 %v1274_v6  ;;  %v1269_v10 = vmul.f32 %v1259_v8, %v1259_v8  ;;  %v1267_v49 = vmul.f32 0.023809524, %v1265_v9  ;;  %v1273_v19 = vsub.f32 %v2708_v61, %v1259_v8 }
 0x9b6   :  { %v1353_v61 = vrot.slane %v1344_v24, %v1019_v47 }
 0x9b7   :  { %v1271_v11 = vsub.f32 %v1267_v49, %v1269_v10 }
 0x9b9   :  { %v1275_v12 = vadd.f32 1e-05, %v1271_v11 }
 0x9bb   :  { %2200 = vrsqrt.f32 %v1275_v12 }
 0x9bf   :  { %v2199_v14 = vpop.eup %2198 }
 0x9c0   :  { %v1278_v16 = vmul.f32 %v2199_v14, %v1272_v13 }
 0x9c2   :  { %v1286_v18 = vmul.f32 %v1563_v15, %v1278_v16 }
 0x9c4   :  { %v1294_v20 = vadd.f32 %v1564_v17, %v1286_v18 }
 0x9c5   :  { %v2201_v21 = vpop.eup %2200 }
 0x9c6   :  { %1426 = vmatmul.mubr.f32.vlgmr.msra.gmra.mrb[16].mxu0 %v1294_v20  ;;  %1857 = vmatprep.mubr.f32.mxu1 %v1294_v20  ;;  %v1279_v22 = vmul.f32 %v2201_v21, %v1273_v19 }
 0x9c7   :  { %1431 = vmatprep.mubr.f32.mxu0 %v2403_v5 }
 0x9c8   :  { %v1287_v3 = vmul.f32 %v1563_v15, %v1279_v22 }
 0x9ca   :  { %v1295_v23 = vadd.f32 %v1564_v17, %v1287_v3 }
 0x9cc   :  { %1432 = vmatmul.mubr.f32.gmra.mrb[18].mxu0 %v1295_v23  ;;  %1858 = vmatmul.mubr.f32.vlgmr.msra.gmra.mrb[12].mxu1 %v1295_v23 }
 0xa99   :  { %v1427_v27 = vpop.f32.mrb[16].mxu0 }
 0xa9a   :  { %v1428_v28 = vadd.f32 %v1427_v27, %v1349_v25  ;;  %v1429_v29 = vpop.f32.mrb[17].mxu0 }
 0xa9b   :  { %v1430_v5 = vadd.f32 %v1429_v29, %v1353_v61 }
 0xa9c   :  { %1513 = vst [vmem:[#allocation14] sm:$0xff] %v1428_v28 }
 0xa9d   :  { %1514 = vst [vmem:[#allocation14 + $0x8] sm:$0xff] %v1430_v5 }
 0xa9f   :  { %v1433_v31 = vpop.f32.mrb[18].mxu0  ;;  %v1859_v32 = vpop.f32.mrb[12].mxu1 }
 0xaa0   :  { %v1434_v33 = vadd.f32 %v1433_v31, %v1349_v25  ;;  %v1510_v34 = vadd.f32 %v1859_v32, %v1357_v30  ;;  %v1435_v36 = vpop.f32.mrb[19].mxu0  ;;  %v1504_v45 = vpop.f32.mrb[13].mxu1 }
 0xaa1   :  { %v1436_v37 = vadd.f32 %v1435_v36, %v1353_v61  ;;  %v1505_v38 = vadd.f32 %v1504_v45, %v1357_v30 }
 0xaa2   :  { %1516 = vst [vmem:[#allocation14 + $0x18] sm:$0xff] %v1434_v33  ;;  %1518 = vst [vmem:[#allocation14 + $0x28] sm:$0xff] %v1510_v34 }
 0xaa3   :  { %1517 = vst [vmem:[#allocation14 + $0x20] sm:$0xff] %v1436_v37  ;;  %1515 = vst [vmem:[#allocation14 + $0x10] sm:$0xff] %v1505_v38 }
 0xaa4   :  { %2367 = shalt.err (!%p2364_p4)
}
 0xaa5   :  { %s2779_s24 = sld [smem:[#allocation24_spill]] }
 0xaab   :  { %s2368_s25 = scalar_lea.hbm %s2779_s24, 768 }
 0xaac   :  { %p2369_p5 = scmp.ne.s32.totalorder %s2779_s24, %s2368_s25  ;;  %p2372_p6 = scmp.lt.u32.totalorder %s2368_s25, %s2779_s24 }
 0xaae   :  { %p2374_p7 = pnand %p2372_p6, %p2369_p5 }
 0xab0   :  { %2377 = shalt.err (!%p2374_p7)
}
 0xab1   :  { %1530 = dma.vmem_to_hbm [thread:$0]  %s1525_s5, 768, %s2779_s24, [#allocation4], %s2395_s28, %s2395_s28, %s2396_s29  }
 0xab2   :  { %2386 = dma.done.wait [#allocation4], 768  }
 0xab3   :  { %2387 = vsyncadd [#allocation4], 4294966528 }
 0xab4   :  { %1534 = vsyncpa [#allocation3], 1 }
 0xab5   :  { %1535 = vsyncpa [#allocation6], 1 }
 0xab6   :  { %1536 = vsyncpa [#allocation9], 1 }
 0xab7   :  { %1537 = vsyncpa [#allocation12], 1 }
 0xab8   :  { %1538 = vsyncpa [#allocation4], 1 }

</bundles_post_ra>
